<compile_context>
chip_gen: v7x
topology: tpu7x:2x2x1
jax: 0.10.0
libtpu: 0.0.40
codegen_flags: <defaults>
</compile_context>

<pallas_src>
import functools

import numpy as np

import jax
import jax.numpy as jnp
from jax.experimental import pallas as pl
from jax.experimental.pallas import tpu as pltpu


# bf16 MXU feed (f32 accumulation / bias / GDN-beta / rsqrt inside the kernel).
_MXU_DTYPE = jnp.bfloat16


def _round_up(x, m):
    return ((x + m - 1) // m) * m


def _pick_tile(dim, candidates):
    for c in candidates:
        if c <= dim and dim % c == 0:
            return c
    return None


@functools.lru_cache(maxsize=1)
def _physical_vmem_bytes():
    try:
        info = pltpu.get_tpu_info()
        v = getattr(info, "vmem_capacity_bytes", None)
        if v and int(v) > (8 << 20):
            return int(v)
    except Exception:
        pass
    return 64 * 1024 * 1024  # conservative (v7x-sized) fallback


# ----------------------------------------------------------------------------
# Pallas kernel: tiled matmul + bias with optional fused (per-phase) GDN/iGDN
# ----------------------------------------------------------------------------
def _mm_kernel(*refs, gdn_mode, n_phases, phase_width):
    if gdn_mode is None:
        x_ref, w_ref, b_ref, o_ref, acc_ref = refs
    else:
        x_ref, w_ref, b_ref, g_ref, gb_ref, o_ref, acc_ref = refs

    kk = pl.program_id(2)

    @pl.when(kk == 0)
    def _():
        acc_ref[...] = jnp.zeros_like(acc_ref)

    acc_ref[...] += jnp.dot(
        x_ref[...], w_ref[...], preferred_element_type=jnp.float32
    )

    @pl.when(kk == pl.num_programs(2) - 1)
    def _():
        y = acc_ref[...] + b_ref[...]          # f32 bias add
        if gdn_mode is None:
            o_ref[...] = y.astype(o_ref.dtype)
        else:
            # GDN:  y / sqrt(beta + gamma @ y^2)   (g_ref holds gamma^T)
            # iGDN: y * sqrt(beta + gamma @ y^2)
            # Applied per deconv sub-pixel phase (each phase is a separate
            # spatial location, so GDN never mixes across phases).
            for ph in range(n_phases):
                sl = slice(ph * phase_width, (ph + 1) * phase_width)
                seg = y[:, sl]
                norm = (
                    jnp.dot((seg * seg).astype(g_ref.dtype), g_ref[...],
                            preferred_element_type=jnp.float32)
                    + gb_ref[...]
                )
                if gdn_mode == "igdn":
                    seg = seg * jnp.sqrt(norm)
                else:
                    seg = seg * jax.lax.rsqrt(norm)
                o_ref[:, sl] = seg.astype(o_ref.dtype)


def matmul_bias(x, w, bias, gdn=None, n_phases=1, out_dtype=jnp.float32):
    """out = x @ w + bias, optionally with a fused per-phase GDN/iGDN epilogue.

    x: (M, K), w: (K, N), bias: (N,).  N = n_phases * C (phase-major layout).
    gdn: None or (gamma (C, C), beta (C,), inverse: bool).
    Returns (M, N) in out_dtype.
    """
    m, kdim = x.shape
    n = w.shape[1]
    assert n % n_phases == 0
    c = n // n_phases

    mxu_item = np.dtype(_MXU_DTYPE).itemsize
    out_item = np.dtype(out_dtype).itemsize
    has_gdn = gdn is not None

    # ---- lane-dense N padding ---------------------------------------------
    gdn_mode, g_t, gbeta, phase_width = None, None, None, 0
    if has_gdn:
        c_pad = _round_up(c, 128)
        n_pad = n_phases * c_pad
        if c_pad != c:
            w = jnp.pad(w.reshape(kdim, n_phases, c),
                        ((0, 0), (0, 0), (0, c_pad - c))).reshape(kdim, n_pad)
            bias = jnp.pad(bias.reshape(n_phases, c),
                           ((0, 0), (0, c_pad - c))).reshape(n_pad)
        gamma, gbeta, inverse = gdn
        gdn_mode = "igdn" if inverse else "gdn"
        g_t = gamma.T                                # kernel does (y*y) @ gamma^T
        if c_pad != c:
            g_t = jnp.pad(g_t, ((0, c_pad - c), (0, c_pad - c)))
            # padded channels: norm = beta = 1 -> y stays 0 (no inf/NaN)
            gbeta = jnp.pad(gbeta, (0, c_pad - c), constant_values=1.0)
        g_t = g_t.astype(_MXU_DTYPE)
        phase_width = c_pad
    else:
        c_pad = c
        n_pad = _round_up(n, 128)
        if n_pad != n:
            w = jnp.pad(w, ((0, 0), (0, n_pad - n)))
            bias = jnp.pad(bias, (0, n_pad - n))

    # ---- K padding: always lane-aligned (conv1's K=100 -> 128) -------------
    kp = _round_up(kdim, 128)
    if kp != kdim:
        x = jnp.pad(x, ((0, 0), (0, kp - kdim)))
        w = jnp.pad(w, ((0, kp - kdim), (0, 0)))

    # ---- generation-aware tile selection ------------------------------------
    phys = _physical_vmem_bytes()
    big_vmem = phys >= (100 << 20)            # v5e/v6e (128 MiB), not v7x (64)
    mk_cands = (1024, 512, 256, 128) if big_vmem else (512, 256, 128)

    tk = _pick_tile(kp, mk_cands) or 128      # kp is a multiple of 128
    tn = n_pad if has_gdn else (_pick_tile(n_pad, (512, 256, 128)) or n_pad)

    tm = _pick_tile(m, mk_cands)
    mp = m
    if tm is None:
        if m <= 1024:
            tm = m
        else:
            mp = _round_up(m, 512)
            x = jnp.pad(x, ((0, mp - m), (0, 0)))
            tm = 512

    # Fused-GDN calls collapse the N grid axis to one block -> make sure the
    # M axis has >= 2 blocks so both v7x TensorCores (megacore) get work.
    if (has_gdn and mp // tm < 2 and mp >= 16
            and mp % 2 == 0 and (mp // 2) % 8 == 0):
        tm = mp // 2

    # ---- VMEM footprint budgeting -------------------------------------------
    def _footprint(tm_, tn_, tk_):
        v = 2 * (tm_ * tk_ + tk_ * tn_) * mxu_item   # double-buffered x & w
        v += 2 * tm_ * tn_ * out_item                # double-buffered output
        v += tm_ * tn_ * 4                           # f32 accumulator scratch
        v += 2 * tn_ * 4                             # bias
        if has_gdn:
            v += 2 * (phase_width * phase_width * mxu_item + phase_width * 4)
        return v

    budget = int(phys * 0.55)
    for _ in range(16):
        if _footprint(tm, tn, tk) <= budget:
            break
        if tk > 128 and (tk // 2) % 128 == 0:
            tk //= 2
        elif tm > 8 and tm % 2 == 0 and (tm // 2) % 8 == 0:
            tm //= 2
        elif (not has_gdn) and tn > 128 and (tn // 2) % 128 == 0:
            tn //= 2
        else:
            break
    vmem_limit = min(int(phys * 0.7),
                     max(32 << 20, _footprint(tm, tn, tk) + (8 << 20)))

    # ---- bf16 MXU feed -------------------------------------------------------
    x = x.astype(_MXU_DTYPE)
    w = w.astype(_MXU_DTYPE)
    bias2 = bias.reshape(1, n_pad).astype(jnp.float32)

    grid = (mp // tm, n_pad // tn, kp // tk)

    in_specs = [
        pl.BlockSpec((tm, tk), lambda i, j, kk: (i, kk)),
        pl.BlockSpec((tk, tn), lambda i, j, kk: (kk, j)),
        pl.BlockSpec((1, tn), lambda i, j, kk: (0, j)),
    ]
    args = [x, w, bias2]
    if has_gdn:
        in_specs += [
            pl.BlockSpec((phase_width, phase_width), lambda i, j, kk: (0, 0)),
            pl.BlockSpec((1, phase_width), lambda i, j, kk: (0, 0)),
        ]
        args += [g_t, gbeta.reshape(1, phase_width).astype(jnp.float32)]

    flops = 2 * mp * kp * n_pad
    transcendentals = 0
    if has_gdn:
        flops += 2 * mp * n_pad * phase_width
        transcendentals = mp * n_pad
    bytes_accessed = int(x.size * mxu_item * (n_pad // tn)
                         + w.size * mxu_item * (mp // tm)
                         + mp * n_pad * out_item)

    out = pl.pallas_call(
        functools.partial(_mm_kernel, gdn_mode=gdn_mode,
                          n_phases=n_phases, phase_width=phase_width),
        out_shape=jax.ShapeDtypeStruct((mp, n_pad), out_dtype),
        grid=grid,
        in_specs=in_specs,
        out_specs=pl.BlockSpec((tm, tn), lambda i, j, kk: (i, j)),
        scratch_shapes=[pltpu.VMEM((tm, tn), jnp.float32)],
        compiler_params=pltpu.CompilerParams(
            dimension_semantics=("parallel", "parallel", "arbitrary"),
            vmem_limit_bytes=vmem_limit,
        ),
        cost_estimate=pl.CostEstimate(
            flops=int(flops),
            transcendentals=int(transcendentals),
            bytes_accessed=bytes_accessed,
        ),
    )(*args)

    out = out[:m]
    if has_gdn and c_pad != c:
        out = out.reshape(m, n_phases, c_pad)[:, :, :c].reshape(m, n)
    else:
        out = out[:, :n]
    return out


# ----------------------------------------------------------------------------
# Conv / deconv glue (pure slicing & padding) around the Pallas matmul
# ----------------------------------------------------------------------------
def _im2col(x_nhwc, kh_size, kw_size, stride, pads):
    """x: (B, H, W, C) -> patches (B, OH, OW, kh*kw*C) ordered [kh, kw, c]."""
    b, h, w, c = x_nhwc.shape
    ph_lo, ph_hi, pw_lo, pw_hi = pads
    if any(pads):
        x_nhwc = jnp.pad(
            x_nhwc, ((0, 0), (ph_lo, ph_hi), (pw_lo, pw_hi), (0, 0)))
    hp, wp = h + ph_lo + ph_hi, w + pw_lo + pw_hi
    oh = (hp - kh_size) // stride + 1
    ow = (wp - kw_size) // stride + 1
    cols = []
    for kh in range(kh_size):
        for kw in range(kw_size):
            cols.append(
                x_nhwc[:, kh:kh + stride * oh:stride,
                       kw:kw + stride * ow:stride, :])
    return jnp.concatenate(cols, axis=-1), oh, ow


def conv2d(x_nhwc, w, bias, stride, padding, gdn=None, out_dtype=jnp.float32):
    """PyTorch-style Conv2d (optionally fused GDN). w: (C_out, C_in, k, k)."""
    c_out, c_in, k, _ = w.shape
    b = x_nhwc.shape[0]
    x_nhwc = x_nhwc.astype(_MXU_DTYPE)   # bf16 patches: half the HBM traffic
    patches, oh, ow = _im2col(x_nhwc, k, k, stride, (padding,) * 4)
    w_mat = jnp.transpose(w, (2, 3, 1, 0)).reshape(k * k * c_in, c_out)
    out = matmul_bias(patches.reshape(b * oh * ow, k * k * c_in), w_mat, bias,
                      gdn=gdn, n_phases=1, out_dtype=out_dtype)
    return out.reshape(b, oh, ow, c_out)


def _phase_geo_1d(s, p, k):
    """Per-phase (j0, q, t): tap start, input offset, tap count (1-D)."""
    geo = []
    for ph in range(s):
        j0 = (ph + p) % s
        q = (ph + p) // s
        t = 0 if j0 >= k else (k - j0 + s - 1) // s
        geo.append((j0, q, t))
    lo = min(q - (t - 1) for (j0, q, t) in geo if t > 0)
    hi = max(q for (j0, q, t) in geo if t > 0)
    return geo, lo, hi


def conv_transpose2d(x_nhwc, w, bias, stride, padding, output_padding,
                     gdn=None, out_dtype=jnp.float32):
    """PyTorch-style ConvTranspose2d, all s*s sub-pixel phases in ONE matmul.

    w: (C_in, C_out, k, k).  The stride-s transposed conv is computed as a
    single stride-1 conv on the un-dilated input with the s*s phase kernels
    (zero-padded to a common tap window) stacked along N; the outputs are
    interleaved with one pixel-shuffle reshape.  Optionally fuses per-phase
    iGDN into the matmul epilogue.
    """
    c_in, c_out, k, _ = w.shape
    s = stride
    b, h, wd, _ = x_nhwc.shape
    h_out = (h - 1) * s - 2 * padding + k + output_padding
    w_out = (wd - 1) * s - 2 * padding + k + output_padding
    assert h_out % s == 0 and w_out % s == 0, (
        "phase-batched ConvTranspose2d requires stride | output size")
    mh, mw = h_out // s, w_out // s

    geo, lo, hi = _phase_geo_1d(s, padding, k)
    L = hi - lo + 1

    # Batched phase kernel: (L, L, C_in, s, s, C_out), window slot e holds
    # input offset (e + lo) relative to the output's base input index m.
    wb = jnp.zeros((L, L, c_in, s, s, c_out), w.dtype)
    for ph_h in range(s):
        j0h, qh, th = geo[ph_h]
        for ph_w in range(s):
            j0w, qw, tw = geo[ph_w]
            for dh in range(th):
                eh = (qh - dh) - lo
                jh = j0h + dh * s
                for dw in range(tw):
                    ew = (qw - dw) - lo
                    jw = j0w + dw * s
                    wb = wb.at[eh, ew, :, ph_h, ph_w, :].set(w[:, :, jh, jw])
    w_mat = wb.reshape(L * L * c_in, s * s * c_out)
    bias_big = jnp.tile(bias, s * s)        # [ph_h, ph_w, co] layout

    # Gather the input window [m+lo, m+hi] for every output block m.
    pb = max(0, -lo)
    pa_h = max(0, (mh - 1) + hi - (h - 1))
    pa_w = max(0, (mw - 1) + hi - (wd - 1))
    xp = jnp.pad(x_nhwc, ((0, 0), (pb, pa_h), (pb, pa_w), (0, 0)))
    start = lo + pb
    xp = xp[:, start:start + mh + L - 1, start:start + mw + L - 1, :]
    xp = xp.astype(_MXU_DTYPE)

    patches, oh, ow = _im2col(xp, L, L, 1, (0, 0, 0, 0))
    assert (oh, ow) == (mh, mw)

    y = matmul_bias(patches.reshape(b * mh * mw, L * L * c_in), w_mat,
                    bias_big, gdn=gdn, n_phases=s * s, out_dtype=out_dtype)

    # Pixel shuffle (single dense transpose instead of s*s strided scatters).
    y = y.reshape(b, mh, mw, s, s, c_out)
    y = jnp.transpose(y, (0, 1, 3, 2, 4, 5)).reshape(b, h_out, w_out, c_out)
    return y


# ----------------------------------------------------------------------------
# SparseAutoencoder9 forward
# ----------------------------------------------------------------------------
def init_params(key, input_channels, num_filters):
    ks = jax.random.split(key, 8)
    nf = num_filters
    f32 = jnp.float32
    return {
        "conv1_w": 0.05 * jax.random.normal(ks[0], (nf, input_channels, 5, 5), f32),
        "conv1_b": 0.01 * jax.random.normal(ks[1], (nf,), f32),
        "gdn1_beta": jnp.ones((nf,), f32),
        "gdn1_gamma": 0.1 * jnp.eye(nf, dtype=f32),
        "conv2_w": 0.05 * jax.random.normal(ks[2], (2 * nf, nf, 5, 5), f32),
        "conv2_b": 0.01 * jax.random.normal(ks[3], (2 * nf,), f32),
        "deconv1_w": 0.05 * jax.random.normal(ks[4], (2 * nf, nf, 5, 5), f32),
        "deconv1_b": 0.01 * jax.random.normal(ks[5], (nf,), f32),
        "igdn1_beta": jnp.ones((nf,), f32),
        "igdn1_gamma": 0.1 * jnp.eye(nf, dtype=f32),
        "deconv2_w": 0.05 * jax.random.normal(ks[6], (nf, input_channels, 5, 5), f32),
        "deconv2_b": 0.01 * jax.random.normal(ks[7], (input_channels,), f32),
    }


@jax.jit
def sparse_autoencoder9_forward(x_nchw, params):
    # NCHW (PyTorch) -> NHWC (kernel layout)
    x = jnp.transpose(x_nchw, (0, 2, 3, 1))

    # encode: GDN fused into conv1's matmul epilogue
    h = conv2d(x, params["conv1_w"], params["conv1_b"], stride=2, padding=2,
               gdn=(params["gdn1_gamma"], params["gdn1_beta"], False),
               out_dtype=_MXU_DTYPE)
    z = conv2d(h, params["conv2_w"], params["conv2_b"], stride=2, padding=2,
               out_dtype=jnp.float32)

    # decode: all 4 deconv phases in one matmul; iGDN fused per phase
    d = conv_transpose2d(z, params["deconv1_w"], params["deconv1_b"],
                         stride=2, padding=2, output_padding=1,
                         gdn=(params["igdn1_gamma"], params["igdn1_beta"], True),
                         out_dtype=_MXU_DTYPE)
    xhat = conv_transpose2d(d, params["deconv2_w"], params["deconv2_b"],
                            stride=2, padding=2, output_padding=1,
                            out_dtype=jnp.float32)

    # back to NCHW to match the PyTorch module's return convention
    return jnp.transpose(z, (0, 3, 1, 2)), jnp.transpose(xhat, (0, 3, 1, 2))


# ----------------------------------------------------------------------------
# Pure-JAX (XLA conv) reference of the same module, for numeric validation
# ----------------------------------------------------------------------------
def _ref_conv2d(x, w, b, stride, padding):
    out = jax.lax.conv_general_dilated(
        x.astype(jnp.float32), jnp.transpose(w, (2, 3, 1, 0)),
        window_strides=(stride, stride),
        padding=[(padding, padding), (padding, padding)],
        dimension_numbers=("NHWC", "HWIO", "NHWC"))
    return out + b


def _ref_deconv2d(x, w, b, stride, padding, output_padding):
    k = w.shape[2]
    wf = jnp.transpose(jnp.flip(w, (2, 3)), (2, 3, 0, 1))   # HWIO, I = C_in
    lo = k - 1 - padding
    hi = k - 1 - padding + output_padding
    out = jax.lax.conv_general_dilated(
        x.astype(jnp.float32), wf, window_strides=(1, 1),
        padding=[(lo, hi), (lo, hi)], lhs_dilation=(stride, stride),
        dimension_numbers=("NHWC", "HWIO", "NHWC"))
    return out + b


def _ref_gdn(x, gamma, beta, inverse):
    norm = jnp.einsum("bhwc,dc->bhwd", x * x, gamma) + beta
    return x * jnp.sqrt(norm) if inverse else x * jax.lax.rsqrt(norm)


@jax.jit
def reference_forward(x_nchw, params):
    x = jnp.transpose(x_nchw, (0, 2, 3, 1))
    h = _ref_gdn(_ref_conv2d(x, params["conv1_w"], params["conv1_b"], 2, 2),
                 params["gdn1_gamma"], params["gdn1_beta"], False)
    z = _ref_conv2d(h, params["conv2_w"], params["conv2_b"], 2, 2)
    d = _ref_gdn(
        _ref_deconv2d(z, params["deconv1_w"], params["deconv1_b"], 2, 2, 1),
        params["igdn1_gamma"], params["igdn1_beta"], True)
    xhat = _ref_deconv2d(d, params["deconv2_w"], params["deconv2_b"], 2, 2, 1)
    return jnp.transpose(z, (0, 3, 1, 2)), jnp.transpose(xhat, (0, 3, 1, 2))


if __name__ == "__main__":
    INPUT_CHANNELS = 4
    NUM_FILTERS = 8  # scaled-down stand-in for 512 (synthetic kernel demo)

    key = jax.random.PRNGKey(0)
    k_x, k_p = jax.random.split(key)
    x = jax.random.normal(k_x, (2, INPUT_CHANNELS, 16, 16), jnp.float32)  # NCHW
    params = init_params(k_p, INPUT_CHANNELS, NUM_FILTERS)

    z, xhat = sparse_autoencoder9_forward(x, params)
    jax.block_until_ready((z, xhat))

    assert z.shape == (2, 2 * NUM_FILTERS, 4, 4), z.shape
    assert xhat.shape == (2, INPUT_CHANNELS, 16, 16), xhat.shape
    assert bool(jnp.all(jnp.isfinite(z))) and bool(jnp.all(jnp.isfinite(xhat)))

    # numeric check vs the pure-JAX reference (bf16 MXU feed -> loose tol)
    z_ref, xhat_ref = reference_forward(x, params)
    jax.block_until_ready((z_ref, xhat_ref))

    def _relerr(a, b):
        return float(jnp.max(jnp.abs(a - b)) / (jnp.max(jnp.abs(b)) + 1e-12))

    err_z = _relerr(z, z_ref)
    err_x = _relerr(xhat, xhat_ref)
    assert err_z < 0.05, f"latent mismatch vs reference: {err_z}"
    assert err_x < 0.05, f"reconstruction mismatch vs reference: {err_x}"

    print("KERNEL_OK")
</pallas_src>

<mosaic_0001>
module attributes {stable_mosaic.version = 11 : i64} {
  func.func @_mm_kernel(%arg0: i32, %arg1: i32, %arg2: i32, %arg3: memref<64x128xbf16, #tpu.memory_space<vmem>>, %arg4: memref<128x128xbf16, #tpu.memory_space<vmem>>, %arg5: memref<1x128xf32, #tpu.memory_space<vmem>>, %arg6: memref<128x128xbf16, #tpu.memory_space<vmem>>, %arg7: memref<1x128xf32, #tpu.memory_space<vmem>>, %arg8: memref<64x128xbf16, #tpu.memory_space<vmem>>, %arg9: memref<64x128xf32, #tpu.memory_space<vmem>>) attributes {dimension_semantics = [#tpu.dimension_semantics<parallel>, #tpu.dimension_semantics<parallel>, #tpu.dimension_semantics<arbitrary>], iteration_bounds = array<i64: 2, 1, 1>, scalar_prefetch = 0 : i64, scratch_operands = 1 : i64, tpu.core_type = #tpu.core_type<tc>, window_params = [{transform_indices = @transform_0, window_bounds = array<i64: 64, 128>}, {transform_indices = @transform_1, window_bounds = array<i64: 128, 128>}, {transform_indices = @transform_2, window_bounds = array<i64: 1, 128>}, {pipeline_mode = #tpu.pipeline_mode<synchronous>, transform_indices = @transform_3, window_bounds = array<i64: 128, 128>}, {pipeline_mode = #tpu.pipeline_mode<synchronous>, transform_indices = @transform_4, window_bounds = array<i64: 1, 128>}, {transform_indices = @transform_5, window_bounds = array<i64: 64, 128>}]} {
    %c0_i32 = arith.constant 0 : i32
    %0 = arith.cmpi eq, %arg2, %c0_i32 : i32
    %1 = arith.extui %0 : i1 to i32
    %c0_i32_0 = arith.constant 0 : i32
    %2 = arith.cmpi ne, %1, %c0_i32_0 : i32
    scf.if %2 {
      %cst_10 = arith.constant 0.000000e+00 : f32
      %12 = vector.broadcast %cst_10 : f32 to vector<64x128xf32>
      %c0_11 = arith.constant 0 : index
      %c0_12 = arith.constant 0 : index
      %13 = vector.load %arg9[%c0_11, %c0_12] : memref<64x128xf32, #tpu.memory_space<vmem>>, vector<64x128xf32>
      tpu.vector_store %arg9[%c0_11, %c0_12], %12 {strides = array<i32>} : memref<64x128xf32, #tpu.memory_space<vmem>>, vector<64x128xf32>,
    } else {
    }
    %c0 = arith.constant 0 : index
    %c0_1 = arith.constant 0 : index
    %3 = vector.load %arg9[%c0, %c0_1] : memref<64x128xf32, #tpu.memory_space<vmem>>, vector<64x128xf32>
    %c0_2 = arith.constant 0 : index
    %c0_3 = arith.constant 0 : index
    %4 = vector.load %arg3[%c0_2, %c0_3] : memref<64x128xbf16, #tpu.memory_space<vmem>>, vector<64x128xbf16>
    %c0_4 = arith.constant 0 : index
    %c0_5 = arith.constant 0 : index
    %5 = vector.load %arg4[%c0_4, %c0_5] : memref<128x128xbf16, #tpu.memory_space<vmem>>, vector<128x128xbf16>
    %cst = arith.constant dense<0.000000e+00> : vector<64x128xf32>
    %6 = tpu.matmul %4, %5, %cst {dimension_numbers = #tpu.dot_dimension_numbers<[1], [0], [0], [1], [0, 0, 1, 1], [], []>} : vector<64x128xbf16>, vector<128x128xbf16>, vector<64x128xf32> -> vector<64x128xf32>
    %7 = arith.addf %3, %6 : vector<64x128xf32>
    %c0_6 = arith.constant 0 : index
    %c0_7 = arith.constant 0 : index
    %8 = vector.load %arg9[%c0_6, %c0_7] : memref<64x128xf32, #tpu.memory_space<vmem>>, vector<64x128xf32>
    tpu.vector_store %arg9[%c0_6, %c0_7], %7 {strides = array<i32>} : memref<64x128xf32, #tpu.memory_space<vmem>>, vector<64x128xf32>,
    %c0_i32_8 = arith.constant 0 : i32
    %9 = arith.cmpi eq, %arg2, %c0_i32_8 : i32
    %10 = arith.extui %9 : i1 to i32
    %c0_i32_9 = arith.constant 0 : i32
    %11 = arith.cmpi ne, %10, %c0_i32_9 : i32
    scf.if %11 {
      %c0_10 = arith.constant 0 : index
      %c0_11 = arith.constant 0 : index
      %12 = vector.load %arg9[%c0_10, %c0_11] : memref<64x128xf32, #tpu.memory_space<vmem>>, vector<64x128xf32>
      %c0_12 = arith.constant 0 : index
      %c0_13 = arith.constant 0 : index
      %13 = vector.load %arg5[%c0_12, %c0_13] : memref<1x128xf32, #tpu.memory_space<vmem>>, vector<1x128xf32>
      %14 = vector.broadcast %13 : vector<1x128xf32> to vector<64x128xf32>
      %15 = arith.addf %12, %14 : vector<64x128xf32>
      %16 = arith.mulf %15, %15 : vector<64x128xf32>
      %17 = arith.truncf %16 : vector<64x128xf32> to vector<64x128xbf16>
      %c0_14 = arith.constant 0 : index
      %c0_15 = arith.constant 0 : index
      %18 = vector.load %arg6[%c0_14, %c0_15] : memref<128x128xbf16, #tpu.memory_space<vmem>>, vector<128x128xbf16>
      %cst_16 = arith.constant dense<0.000000e+00> : vector<64x128xf32>
      %19 = tpu.matmul %17, %18, %cst_16 {dimension_numbers = #tpu.dot_dimension_numbers<[1], [0], [0], [1], [0, 0, 1, 1], [], []>} : vector<64x128xbf16>, vector<128x128xbf16>, vector<64x128xf32> -> vector<64x128xf32>
      %c0_17 = arith.constant 0 : index
      %c0_18 = arith.constant 0 : index
      %20 = vector.load %arg7[%c0_17, %c0_18] : memref<1x128xf32, #tpu.memory_space<vmem>>, vector<1x128xf32>
      %21 = vector.broadcast %20 : vector<1x128xf32> to vector<64x128xf32>
      %22 = arith.addf %19, %21 : vector<64x128xf32>
      %23 = math.rsqrt %22 : vector<64x128xf32>
      %24 = arith.mulf %15, %23 : vector<64x128xf32>
      %25 = arith.truncf %24 : vector<64x128xf32> to vector<64x128xbf16>
      %c0_19 = arith.constant 0 : index
      %c0_20 = arith.constant 0 : index
      %26 = vector.load %arg8[%c0_19, %c0_20] : memref<64x128xbf16, #tpu.memory_space<vmem>>, vector<64x128xbf16>
      tpu.vector_store %arg8[%c0_19, %c0_20], %25 {strides = array<i32>} : memref<64x128xbf16, #tpu.memory_space<vmem>>, vector<64x128xbf16>,
    } else {
    }
    return
  }
  func.func @transform_0(%arg0: i32, %arg1: i32, %arg2: i32) -> (i32, i32) {
    %c0_i32 = arith.constant 0 : i32
    return %arg0, %arg2 : i32, i32
  }
  func.func @transform_1(%arg0: i32, %arg1: i32, %arg2: i32) -> (i32, i32) {
    %c0_i32 = arith.constant 0 : i32
    return %arg2, %arg1 : i32, i32
  }
  func.func @transform_2(%arg0: i32, %arg1: i32, %arg2: i32) -> (i32, i32) {
    %c0_i32 = arith.constant 0 : i32
    %c0_i32_0 = arith.constant 0 : i32
    return %c0_i32, %arg1 : i32, i32
  }
  func.func @transform_3(%arg0: i32, %arg1: i32, %arg2: i32) -> (i32, i32) {
    %c0_i32 = arith.constant 0 : i32
    %c0_i32_0 = arith.constant 0 : i32
    %c0_i32_1 = arith.constant 0 : i32
    return %c0_i32, %c0_i32_0 : i32, i32
  }
  func.func @transform_4(%arg0: i32, %arg1: i32, %arg2: i32) -> (i32, i32) {
    %c0_i32 = arith.constant 0 : i32
    %c0_i32_0 = arith.constant 0 : i32
    %c0_i32_1 = arith.constant 0 : i32
    return %c0_i32, %c0_i32_0 : i32, i32
  }
  func.func @transform_5(%arg0: i32, %arg1: i32, %arg2: i32) -> (i32, i32) {
    %c0_i32 = arith.constant 0 : i32
    return %arg0, %arg1 : i32, i32
  }
}

module attributes {stable_mosaic.version = 11 : i64} {
  func.func @_mm_kernel(%arg0: i32, %arg1: i32, %arg2: i32, %arg3: memref<32x256xbf16, #tpu.memory_space<vmem>>, %arg4: memref<256x128xbf16, #tpu.memory_space<vmem>>, %arg5: memref<1x128xf32, #tpu.memory_space<vmem>>, %arg6: memref<32x128xf32, #tpu.memory_space<vmem>>, %arg7: memref<32x128xf32, #tpu.memory_space<vmem>>) attributes {dimension_semantics = [#tpu.dimension_semantics<parallel>, #tpu.dimension_semantics<parallel>, #tpu.dimension_semantics<arbitrary>], iteration_bounds = array<i64: 1, 1, 1>, scalar_prefetch = 0 : i64, scratch_operands = 1 : i64, tpu.core_type = #tpu.core_type<tc>, window_params = [{transform_indices = @transform_0, window_bounds = array<i64: 32, 256>}, {transform_indices = @transform_1, window_bounds = array<i64: 256, 128>}, {transform_indices = @transform_2, window_bounds = array<i64: 1, 128>}, {transform_indices = @transform_3, window_bounds = array<i64: 32, 128>}]} {
    %c0_i32 = arith.constant 0 : i32
    %0 = arith.cmpi eq, %arg2, %c0_i32 : i32
    %1 = arith.extui %0 : i1 to i32
    %c0_i32_0 = arith.constant 0 : i32
    %2 = arith.cmpi ne, %1, %c0_i32_0 : i32
    scf.if %2 {
      %cst_10 = arith.constant 0.000000e+00 : f32
      %12 = vector.broadcast %cst_10 : f32 to vector<32x128xf32>
      %c0_11 = arith.constant 0 : index
      %c0_12 = arith.constant 0 : index
      %13 = vector.load %arg7[%c0_11, %c0_12] : memref<32x128xf32, #tpu.memory_space<vmem>>, vector<32x128xf32>
      tpu.vector_store %arg7[%c0_11, %c0_12], %12 {strides = array<i32>} : memref<32x128xf32, #tpu.memory_space<vmem>>, vector<32x128xf32>,
    } else {
    }
    %c0 = arith.constant 0 : index
    %c0_1 = arith.constant 0 : index
    %3 = vector.load %arg7[%c0, %c0_1] : memref<32x128xf32, #tpu.memory_space<vmem>>, vector<32x128xf32>
    %c0_2 = arith.constant 0 : index
    %c0_3 = arith.constant 0 : index
    %4 = vector.load %arg3[%c0_2, %c0_3] : memref<32x256xbf16, #tpu.memory_space<vmem>>, vector<32x256xbf16>
    %c0_4 = arith.constant 0 : index
    %c0_5 = arith.constant 0 : index
    %5 = vector.load %arg4[%c0_4, %c0_5] : memref<256x128xbf16, #tpu.memory_space<vmem>>, vector<256x128xbf16>
    %cst = arith.constant dense<0.000000e+00> : vector<32x128xf32>
    %6 = tpu.matmul %4, %5, %cst {dimension_numbers = #tpu.dot_dimension_numbers<[1], [0], [0], [1], [0, 0, 1, 1], [], []>} : vector<32x256xbf16>, vector<256x128xbf16>, vector<32x128xf32> -> vector<32x128xf32>
    %7 = arith.addf %3, %6 : vector<32x128xf32>
    %c0_6 = arith.constant 0 : index
    %c0_7 = arith.constant 0 : index
    %8 = vector.load %arg7[%c0_6, %c0_7] : memref<32x128xf32, #tpu.memory_space<vmem>>, vector<32x128xf32>
    tpu.vector_store %arg7[%c0_6, %c0_7], %7 {strides = array<i32>} : memref<32x128xf32, #tpu.memory_space<vmem>>, vector<32x128xf32>,
    %c0_i32_8 = arith.constant 0 : i32
    %9 = arith.cmpi eq, %arg2, %c0_i32_8 : i32
    %10 = arith.extui %9 : i1 to i32
    %c0_i32_9 = arith.constant 0 : i32
    %11 = arith.cmpi ne, %10, %c0_i32_9 : i32
    scf.if %11 {
      %c0_10 = arith.constant 0 : index
      %c0_11 = arith.constant 0 : index
      %12 = vector.load %arg7[%c0_10, %c0_11] : memref<32x128xf32, #tpu.memory_space<vmem>>, vector<32x128xf32>
      %c0_12 = arith.constant 0 : index
      %c0_13 = arith.constant 0 : index
      %13 = vector.load %arg5[%c0_12, %c0_13] : memref<1x128xf32, #tpu.memory_space<vmem>>, vector<1x128xf32>
      %14 = vector.broadcast %13 : vector<1x128xf32> to vector<32x128xf32>
      %15 = arith.addf %12, %14 : vector<32x128xf32>
      %c0_14 = arith.constant 0 : index
      %c0_15 = arith.constant 0 : index
      %16 = vector.load %arg6[%c0_14, %c0_15] : memref<32x128xf32, #tpu.memory_space<vmem>>, vector<32x128xf32>
      tpu.vector_store %arg6[%c0_14, %c0_15], %15 {strides = array<i32>} : memref<32x128xf32, #tpu.memory_space<vmem>>, vector<32x128xf32>,
    } else {
    }
    return
  }
  func.func @transform_0(%arg0: i32, %arg1: i32, %arg2: i32) -> (i32, i32) {
    %c0_i32 = arith.constant 0 : i32
    return %arg0, %arg2 : i32, i32
  }
  func.func @transform_1(%arg0: i32, %arg1: i32, %arg2: i32) -> (i32, i32) {
    %c0_i32 = arith.constant 0 : i32
    return %arg2, %arg1 : i32, i32
  }
  func.func @transform_2(%arg0: i32, %arg1: i32, %arg2: i32) -> (i32, i32) {
    %c0_i32 = arith.constant 0 : i32
    %c0_i32_0 = arith.constant 0 : i32
    return %c0_i32, %arg1 : i32, i32
  }
  func.func @transform_3(%arg0: i32, %arg1: i32, %arg2: i32) -> (i32, i32) {
    %c0_i32 = arith.constant 0 : i32
    return %arg0, %arg1 : i32, i32
  }
}

module attributes {stable_mosaic.version = 11 : i64} {
  func.func @_mm_kernel(%arg0: i32, %arg1: i32, %arg2: i32, %arg3: memref<16x256xbf16, #tpu.memory_space<vmem>>, %arg4: memref<256x512xbf16, #tpu.memory_space<vmem>>, %arg5: memref<1x512xf32, #tpu.memory_space<vmem>>, %arg6: memref<128x128xbf16, #tpu.memory_space<vmem>>, %arg7: memref<1x128xf32, #tpu.memory_space<vmem>>, %arg8: memref<16x512xbf16, #tpu.memory_space<vmem>>, %arg9: memref<16x512xf32, #tpu.memory_space<vmem>>) attributes {dimension_semantics = [#tpu.dimension_semantics<parallel>, #tpu.dimension_semantics<parallel>, #tpu.dimension_semantics<arbitrary>], iteration_bounds = array<i64: 2, 1, 1>, scalar_prefetch = 0 : i64, scratch_operands = 1 : i64, tpu.core_type = #tpu.core_type<tc>, window_params = [{transform_indices = @transform_0, window_bounds = array<i64: 16, 256>}, {transform_indices = @transform_1, window_bounds = array<i64: 256, 512>}, {transform_indices = @transform_2, window_bounds = array<i64: 1, 512>}, {pipeline_mode = #tpu.pipeline_mode<synchronous>, transform_indices = @transform_3, window_bounds = array<i64: 128, 128>}, {pipeline_mode = #tpu.pipeline_mode<synchronous>, transform_indices = @transform_4, window_bounds = array<i64: 1, 128>}, {transform_indices = @transform_5, window_bounds = array<i64: 16, 512>}]} {
    %c0_i32 = arith.constant 0 : i32
    %0 = arith.cmpi eq, %arg2, %c0_i32 : i32
    %1 = arith.extui %0 : i1 to i32
    %c0_i32_0 = arith.constant 0 : i32
    %2 = arith.cmpi ne, %1, %c0_i32_0 : i32
    scf.if %2 {
      %cst_10 = arith.constant 0.000000e+00 : f32
      %12 = vector.broadcast %cst_10 : f32 to vector<16x512xf32>
      %c0_11 = arith.constant 0 : index
      %c0_12 = arith.constant 0 : index
      %13 = vector.load %arg9[%c0_11, %c0_12] : memref<16x512xf32, #tpu.memory_space<vmem>>, vector<16x512xf32>
      tpu.vector_store %arg9[%c0_11, %c0_12], %12 {strides = array<i32>} : memref<16x512xf32, #tpu.memory_space<vmem>>, vector<16x512xf32>,
    } else {
    }
    %c0 = arith.constant 0 : index
    %c0_1 = arith.constant 0 : index
    %3 = vector.load %arg9[%c0, %c0_1] : memref<16x512xf32, #tpu.memory_space<vmem>>, vector<16x512xf32>
    %c0_2 = arith.constant 0 : index
    %c0_3 = arith.constant 0 : index
    %4 = vector.load %arg3[%c0_2, %c0_3] : memref<16x256xbf16, #tpu.memory_space<vmem>>, vector<16x256xbf16>
    %c0_4 = arith.constant 0 : index
    %c0_5 = arith.constant 0 : index
    %5 = vector.load %arg4[%c0_4, %c0_5] : memref<256x512xbf16, #tpu.memory_space<vmem>>, vector<256x512xbf16>
    %cst = arith.constant dense<0.000000e+00> : vector<16x512xf32>
    %6 = tpu.matmul %4, %5, %cst {dimension_numbers = #tpu.dot_dimension_numbers<[1], [0], [0], [1], [0, 0, 1, 1], [], []>} : vector<16x256xbf16>, vector<256x512xbf16>, vector<16x512xf32> -> vector<16x512xf32>
    %7 = arith.addf %3, %6 : vector<16x512xf32>
    %c0_6 = arith.constant 0 : index
    %c0_7 = arith.constant 0 : index
    %8 = vector.load %arg9[%c0_6, %c0_7] : memref<16x512xf32, #tpu.memory_space<vmem>>, vector<16x512xf32>
    tpu.vector_store %arg9[%c0_6, %c0_7], %7 {strides = array<i32>} : memref<16x512xf32, #tpu.memory_space<vmem>>, vector<16x512xf32>,
    %c0_i32_8 = arith.constant 0 : i32
    %9 = arith.cmpi eq, %arg2, %c0_i32_8 : i32
    %10 = arith.extui %9 : i1 to i32
    %c0_i32_9 = arith.constant 0 : i32
    %11 = arith.cmpi ne, %10, %c0_i32_9 : i32
    scf.if %11 {
      %c0_10 = arith.constant 0 : index
      %c0_11 = arith.constant 0 : index
      %12 = vector.load %arg9[%c0_10, %c0_11] : memref<16x512xf32, #tpu.memory_space<vmem>>, vector<16x512xf32>
      %c0_12 = arith.constant 0 : index
      %c0_13 = arith.constant 0 : index
      %13 = vector.load %arg5[%c0_12, %c0_13] : memref<1x512xf32, #tpu.memory_space<vmem>>, vector<1x512xf32>
      %14 = vector.broadcast %13 : vector<1x512xf32> to vector<16x512xf32>
      %15 = arith.addf %12, %14 : vector<16x512xf32>
      %16 = vector.extract_strided_slice %15 {offsets = [0, 0], sizes = [16, 128], strides = [1, 1]} : vector<16x512xf32> to vector<16x128xf32>
      %17 = arith.mulf %16, %16 : vector<16x128xf32>
      %18 = arith.truncf %17 : vector<16x128xf32> to vector<16x128xbf16>
      %c0_14 = arith.constant 0 : index
      %c0_15 = arith.constant 0 : index
      %19 = vector.load %arg6[%c0_14, %c0_15] : memref<128x128xbf16, #tpu.memory_space<vmem>>, vector<128x128xbf16>
      %cst_16 = arith.constant dense<0.000000e+00> : vector<16x128xf32>
      %20 = tpu.matmul %18, %19, %cst_16 {dimension_numbers = #tpu.dot_dimension_numbers<[1], [0], [0], [1], [0, 0, 1, 1], [], []>} : vector<16x128xbf16>, vector<128x128xbf16>, vector<16x128xf32> -> vector<16x128xf32>
      %c0_17 = arith.constant 0 : index
      %c0_18 = arith.constant 0 : index
      %21 = vector.load %arg7[%c0_17, %c0_18] : memref<1x128xf32, #tpu.memory_space<vmem>>, vector<1x128xf32>
      %22 = vector.broadcast %21 : vector<1x128xf32> to vector<16x128xf32>
      %23 = arith.addf %20, %22 : vector<16x128xf32>
      %24 = math.sqrt %23 : vector<16x128xf32>
      %25 = arith.mulf %16, %24 : vector<16x128xf32>
      %26 = arith.truncf %25 : vector<16x128xf32> to vector<16x128xbf16>
      %c0_19 = arith.constant 0 : index
      %c0_20 = arith.constant 0 : index
      %27 = vector.load %arg8[%c0_19, %c0_20] : memref<16x512xbf16, #tpu.memory_space<vmem>>, vector<16x128xbf16>
      tpu.vector_store %arg8[%c0_19, %c0_20], %26 {strides = array<i32>} : memref<16x512xbf16, #tpu.memory_space<vmem>>, vector<16x128xbf16>,
      %28 = vector.extract_strided_slice %15 {offsets = [0, 128], sizes = [16, 128], strides = [1, 1]} : vector<16x512xf32> to vector<16x128xf32>
      %29 = arith.mulf %28, %28 : vector<16x128xf32>
      %30 = arith.truncf %29 : vector<16x128xf32> to vector<16x128xbf16>
      %c0_21 = arith.constant 0 : index
      %c0_22 = arith.constant 0 : index
      %31 = vector.load %arg6[%c0_21, %c0_22] : memref<128x128xbf16, #tpu.memory_space<vmem>>, vector<128x128xbf16>
      %cst_23 = arith.constant dense<0.000000e+00> : vector<16x128xf32>
      %32 = tpu.matmul %30, %31, %cst_23 {dimension_numbers = #tpu.dot_dimension_numbers<[1], [0], [0], [1], [0, 0, 1, 1], [], []>} : vector<16x128xbf16>, vector<128x128xbf16>, vector<16x128xf32> -> vector<16x128xf32>
      %c0_24 = arith.constant 0 : index
      %c0_25 = arith.constant 0 : index
      %33 = vector.load %arg7[%c0_24, %c0_25] : memref<1x128xf32, #tpu.memory_space<vmem>>, vector<1x128xf32>
      %34 = vector.broadcast %33 : vector<1x128xf32> to vector<16x128xf32>
      %35 = arith.addf %32, %34 : vector<16x128xf32>
      %36 = math.sqrt %35 : vector<16x128xf32>
      %37 = arith.mulf %28, %36 : vector<16x128xf32>
      %38 = arith.truncf %37 : vector<16x128xf32> to vector<16x128xbf16>
      %c0_26 = arith.constant 0 : index
      %c128 = arith.constant 128 : index
      %39 = vector.load %arg8[%c0_26, %c128] : memref<16x512xbf16, #tpu.memory_space<vmem>>, vector<16x128xbf16>
      tpu.vector_store %arg8[%c0_26, %c128], %38 {strides = array<i32>} : memref<16x512xbf16, #tpu.memory_space<vmem>>, vector<16x128xbf16>,
      %40 = vector.extract_strided_slice %15 {offsets = [0, 256], sizes = [16, 128], strides = [1, 1]} : vector<16x512xf32> to vector<16x128xf32>
      %41 = arith.mulf %40, %40 : vector<16x128xf32>
      %42 = arith.truncf %41 : vector<16x128xf32> to vector<16x128xbf16>
      %c0_27 = arith.constant 0 : index
      %c0_28 = arith.constant 0 : index
      %43 = vector.load %arg6[%c0_27, %c0_28] : memref<128x128xbf16, #tpu.memory_space<vmem>>, vector<128x128xbf16>
      %cst_29 = arith.constant dense<0.000000e+00> : vector<16x128xf32>
      %44 = tpu.matmul %42, %43, %cst_29 {dimension_numbers = #tpu.dot_dimension_numbers<[1], [0], [0], [1], [0, 0, 1, 1], [], []>} : vector<16x128xbf16>, vector<128x128xbf16>, vector<16x128xf32> -> vector<16x128xf32>
      %c0_30 = arith.constant 0 : index
      %c0_31 = arith.constant 0 : index
      %45 = vector.load %arg7[%c0_30, %c0_31] : memref<1x128xf32, #tpu.memory_space<vmem>>, vector<1x128xf32>
      %46 = vector.broadcast %45 : vector<1x128xf32> to vector<16x128xf32>
      %47 = arith.addf %44, %46 : vector<16x128xf32>
      %48 = math.sqrt %47 : vector<16x128xf32>
      %49 = arith.mulf %40, %48 : vector<16x128xf32>
      %50 = arith.truncf %49 : vector<16x128xf32> to vector<16x128xbf16>
      %c0_32 = arith.constant 0 : index
      %c256 = arith.constant 256 : index
      %51 = vector.load %arg8[%c0_32, %c256] : memref<16x512xbf16, #tpu.memory_space<vmem>>, vector<16x128xbf16>
      tpu.vector_store %arg8[%c0_32, %c256], %50 {strides = array<i32>} : memref<16x512xbf16, #tpu.memory_space<vmem>>, vector<16x128xbf16>,
      %52 = vector.extract_strided_slice %15 {offsets = [0, 384], sizes = [16, 128], strides = [1, 1]} : vector<16x512xf32> to vector<16x128xf32>
      %53 = arith.mulf %52, %52 : vector<16x128xf32>
      %54 = arith.truncf %53 : vector<16x128xf32> to vector<16x128xbf16>
      %c0_33 = arith.constant 0 : index
      %c0_34 = arith.constant 0 : index
      %55 = vector.load %arg6[%c0_33, %c0_34] : memref<128x128xbf16, #tpu.memory_space<vmem>>, vector<128x128xbf16>
      %cst_35 = arith.constant dense<0.000000e+00> : vector<16x128xf32>
      %56 = tpu.matmul %54, %55, %cst_35 {dimension_numbers = #tpu.dot_dimension_numbers<[1], [0], [0], [1], [0, 0, 1, 1], [], []>} : vector<16x128xbf16>, vector<128x128xbf16>, vector<16x128xf32> -> vector<16x128xf32>
      %c0_36 = arith.constant 0 : index
      %c0_37 = arith.constant 0 : index
      %57 = vector.load %arg7[%c0_36, %c0_37] : memref<1x128xf32, #tpu.memory_space<vmem>>, vector<1x128xf32>
      %58 = vector.broadcast %57 : vector<1x128xf32> to vector<16x128xf32>
      %59 = arith.addf %56, %58 : vector<16x128xf32>
      %60 = math.sqrt %59 : vector<16x128xf32>
      %61 = arith.mulf %52, %60 : vector<16x128xf32>
      %62 = arith.truncf %61 : vector<16x128xf32> to vector<16x128xbf16>
      %c0_38 = arith.constant 0 : index
      %c384 = arith.constant 384 : index
      %63 = vector.load %arg8[%c0_38, %c384] : memref<16x512xbf16, #tpu.memory_space<vmem>>, vector<16x128xbf16>
      tpu.vector_store %arg8[%c0_38, %c384], %62 {strides = array<i32>} : memref<16x512xbf16, #tpu.memory_space<vmem>>, vector<16x128xbf16>,
    } else {
    }
    return
  }
  func.func @transform_0(%arg0: i32, %arg1: i32, %arg2: i32) -> (i32, i32) {
    %c0_i32 = arith.constant 0 : i32
    return %arg0, %arg2 : i32, i32
  }
  func.func @transform_1(%arg0: i32, %arg1: i32, %arg2: i32) -> (i32, i32) {
    %c0_i32 = arith.constant 0 : i32
    return %arg2, %arg1 : i32, i32
  }
  func.func @transform_2(%arg0: i32, %arg1: i32, %arg2: i32) -> (i32, i32) {
    %c0_i32 = arith.constant 0 : i32
    %c0_i32_0 = arith.constant 0 : i32
    return %c0_i32, %arg1 : i32, i32
  }
  func.func @transform_3(%arg0: i32, %arg1: i32, %arg2: i32) -> (i32, i32) {
    %c0_i32 = arith.constant 0 : i32
    %c0_i32_0 = arith.constant 0 : i32
    %c0_i32_1 = arith.constant 0 : i32
    return %c0_i32, %c0_i32_0 : i32, i32
  }
  func.func @transform_4(%arg0: i32, %arg1: i32, %arg2: i32) -> (i32, i32) {
    %c0_i32 = arith.constant 0 : i32
    %c0_i32_0 = arith.constant 0 : i32
    %c0_i32_1 = arith.constant 0 : i32
    return %c0_i32, %c0_i32_0 : i32, i32
  }
  func.func @transform_5(%arg0: i32, %arg1: i32, %arg2: i32) -> (i32, i32) {
    %c0_i32 = arith.constant 0 : i32
    return %arg0, %arg1 : i32, i32
  }
}

module attributes {stable_mosaic.version = 11 : i64} {
  func.func @_mm_kernel(%arg0: i32, %arg1: i32, %arg2: i32, %arg3: memref<128x128xbf16, #tpu.memory_space<vmem>>, %arg4: memref<128x128xbf16, #tpu.memory_space<vmem>>, %arg5: memref<1x128xf32, #tpu.memory_space<vmem>>, %arg6: memref<128x128xf32, #tpu.memory_space<vmem>>, %arg7: memref<128x128xf32, #tpu.memory_space<vmem>>) attributes {dimension_semantics = [#tpu.dimension_semantics<parallel>, #tpu.dimension_semantics<parallel>, #tpu.dimension_semantics<arbitrary>], iteration_bounds = array<i64: 1, 1, 1>, scalar_prefetch = 0 : i64, scratch_operands = 1 : i64, tpu.core_type = #tpu.core_type<tc>, window_params = [{transform_indices = @transform_0, window_bounds = array<i64: 128, 128>}, {transform_indices = @transform_1, window_bounds = array<i64: 128, 128>}, {transform_indices = @transform_2, window_bounds = array<i64: 1, 128>}, {transform_indices = @transform_3, window_bounds = array<i64: 128, 128>}]} {
    %c0_i32 = arith.constant 0 : i32
    %0 = arith.cmpi eq, %arg2, %c0_i32 : i32
    %1 = arith.extui %0 : i1 to i32
    %c0_i32_0 = arith.constant 0 : i32
    %2 = arith.cmpi ne, %1, %c0_i32_0 : i32
    scf.if %2 {
      %cst_10 = arith.constant 0.000000e+00 : f32
      %12 = vector.broadcast %cst_10 : f32 to vector<128x128xf32>
      %c0_11 = arith.constant 0 : index
      %c0_12 = arith.constant 0 : index
      %13 = vector.load %arg7[%c0_11, %c0_12] : memref<128x128xf32, #tpu.memory_space<vmem>>, vector<128x128xf32>
      tpu.vector_store %arg7[%c0_11, %c0_12], %12 {strides = array<i32>} : memref<128x128xf32, #tpu.memory_space<vmem>>, vector<128x128xf32>,
    } else {
    }
    %c0 = arith.constant 0 : index
    %c0_1 = arith.constant 0 : index
    %3 = vector.load %arg7[%c0, %c0_1] : memref<128x128xf32, #tpu.memory_space<vmem>>, vector<128x128xf32>
    %c0_2 = arith.constant 0 : index
    %c0_3 = arith.constant 0 : index
    %4 = vector.load %arg3[%c0_2, %c0_3] : memref<128x128xbf16, #tpu.memory_space<vmem>>, vector<128x128xbf16>
    %c0_4 = arith.constant 0 : index
    %c0_5 = arith.constant 0 : index
    %5 = vector.load %arg4[%c0_4, %c0_5] : memref<128x128xbf16, #tpu.memory_space<vmem>>, vector<128x128xbf16>
    %cst = arith.constant dense<0.000000e+00> : vector<128x128xf32>
    %6 = tpu.matmul %4, %5, %cst {dimension_numbers = #tpu.dot_dimension_numbers<[1], [0], [0], [1], [0, 0, 1, 1], [], []>} : vector<128x128xbf16>, vector<128x128xbf16>, vector<128x128xf32> -> vector<128x128xf32>
    %7 = arith.addf %3, %6 : vector<128x128xf32>
    %c0_6 = arith.constant 0 : index
    %c0_7 = arith.constant 0 : index
    %8 = vector.load %arg7[%c0_6, %c0_7] : memref<128x128xf32, #tpu.memory_space<vmem>>, vector<128x128xf32>
    tpu.vector_store %arg7[%c0_6, %c0_7], %7 {strides = array<i32>} : memref<128x128xf32, #tpu.memory_space<vmem>>, vector<128x128xf32>,
    %c0_i32_8 = arith.constant 0 : i32
    %9 = arith.cmpi eq, %arg2, %c0_i32_8 : i32
    %10 = arith.extui %9 : i1 to i32
    %c0_i32_9 = arith.constant 0 : i32
    %11 = arith.cmpi ne, %10, %c0_i32_9 : i32
    scf.if %11 {
      %c0_10 = arith.constant 0 : index
      %c0_11 = arith.constant 0 : index
      %12 = vector.load %arg7[%c0_10, %c0_11] : memref<128x128xf32, #tpu.memory_space<vmem>>, vector<128x128xf32>
      %c0_12 = arith.constant 0 : index
      %c0_13 = arith.constant 0 : index
      %13 = vector.load %arg5[%c0_12, %c0_13] : memref<1x128xf32, #tpu.memory_space<vmem>>, vector<1x128xf32>
      %14 = vector.broadcast %13 : vector<1x128xf32> to vector<128x128xf32>
      %15 = arith.addf %12, %14 : vector<128x128xf32>
      %c0_14 = arith.constant 0 : index
      %c0_15 = arith.constant 0 : index
      %16 = vector.load %arg6[%c0_14, %c0_15] : memref<128x128xf32, #tpu.memory_space<vmem>>, vector<128x128xf32>
      tpu.vector_store %arg6[%c0_14, %c0_15], %15 {strides = array<i32>} : memref<128x128xf32, #tpu.memory_space<vmem>>, vector<128x128xf32>,
    } else {
    }
    return
  }
  func.func @transform_0(%arg0: i32, %arg1: i32, %arg2: i32) -> (i32, i32) {
    %c0_i32 = arith.constant 0 : i32
    return %arg0, %arg2 : i32, i32
  }
  func.func @transform_1(%arg0: i32, %arg1: i32, %arg2: i32) -> (i32, i32) {
    %c0_i32 = arith.constant 0 : i32
    return %arg2, %arg1 : i32, i32
  }
  func.func @transform_2(%arg0: i32, %arg1: i32, %arg2: i32) -> (i32, i32) {
    %c0_i32 = arith.constant 0 : i32
    %c0_i32_0 = arith.constant 0 : i32
    return %c0_i32, %arg1 : i32, i32
  }
  func.func @transform_3(%arg0: i32, %arg1: i32, %arg2: i32) -> (i32, i32) {
    %c0_i32 = arith.constant 0 : i32
    return %arg0, %arg1 : i32, i32
  }
}

</mosaic_0001>

<bundles_post_ra>
// kernel: sparse_autoencoder9_forward.4
= control target key start
LH: loop header
LB: loop body
LE: loop exit
PB: predicated region body
PF: predicated region fallthrough
CT: control target
= control target key end

     0   :  { %s1112_s18 = smov 0   ;;  %s1114_s19 = smov 0   ;;  %s1212_s0 = inlined_call_operand.vmem [shape: bf16[128,128], index: 0, kind: input, shape index: {}]   ;;  %s1213_s1 = inlined_call_operand.vmem [shape: bf16[128,128], index: 1, kind: input, shape index: {}]   ;;  %s1214_s2 = inlined_call_operand.vmem [shape: f32[1,128], index: 2, kind: input, shape index: {}]   ;;  %s1215_s3 = inlined_call_operand.vmem [shape: bf16[128,128], index: 3, kind: input, shape index: {}]   ;;  %s1216_s4 = inlined_call_operand.vmem [shape: f32[1,128], index: 4, kind: input, shape index: {}]   ;;  %s1217_s5 = inlined_call_operand.vmem [shape: bf16[128,128], index: 5, kind: output, shape index: {}]  }
   0x1   :  { %s1116_s20 = smov 0  }
   0x2 LB: > { %s34_s21 = sadd.s32 1, %s1076_s19  ;;  %p858_p0 = scmp.ge.s32.totalorder %s1080_s20, 1  ;;  %s1080_s20 = sphi %s1116_s20, %s15_s20   ;;  %s1076_s19 = sphi %s1114_s19, %s1219_s19   ;;  %s1072_s18 = sphi %s1112_s18, %s1218_s18  }
   0x3   : > { %p36_p1 = scmp.ge.s32.totalorder %s34_s21, 2  ;;  %p238_p2 = scmp.lt.s32.totalorder %s1080_s20, 3 }
   0x5   : > { %s1221_s21 = smov (%p36_p1, %s34_s21), 0  ;;  %p239_p3 = pnand %p858_p0, %p238_p2 }
   0x6   : > { %v1022_v0 = vld [vmem:[%s1213_s1] sm:$0xff] (!%p239_p3)   ;;  %s859_s24 = sshll.u32 (!%p239_p3), %s1072_s18, 3  ;;  %v1023_v1 = vld [vmem:[%s1213_s1 + $0x8] sm:$0xff] (!%p239_p3)   ;;  %v1024_v2 = vld [vmem:[%s1213_s1 + $0x10] sm:$0xff] (!%p239_p3)  }
   0x7   : > { %242 = sbr.rel (%p239_p3) target bundleno = 502 (0x1f6), region = 40  ;;  %p284_p4 = scmp.lt.s32.totalorder (!%p239_p3), %s859_s24, 15  ;;  %950 = vmatprep.subr.bf16.mxu0 (!%p239_p3), %v1022_v0  ;;  %v1025_v3 = vld [vmem:[%s1213_s1 + $0x18] sm:$0xff] (!%p239_p3)   ;;  %v1026_v5 = vld [vmem:[%s1213_s1 + $0x20] sm:$0xff] (!%p239_p3)   ;;  %v1035_v7 = vld [vmem:[%s1215_s3 + $0x8] sm:$0xff] (!%p239_p3)  }
   0x8   : > { %951 = vmatpush3.bf16.msra.mxu0 (!%p239_p3), %v1022_v0  ;;  %v1034_v6 = vld [vmem:[%s1215_s3] sm:$0xff] (!%p239_p3)   ;;  %v1027_v8 = vld [vmem:[%s1213_s1 + $0x28] sm:$0xff] (!%p239_p3)   ;;  %v1036_v9 = vld [vmem:[%s1215_s3 + $0x10] sm:$0xff] (!%p239_p3)  }
   0x9   : > { %952 = vmatprep.subr.bf16.mxu0 (!%p239_p3), %v1023_v1  ;;  %974 = vmatprep.subr.bf16.mxu1 (!%p239_p3), %v1034_v6  ;;  %v1028_v10 = vld [vmem:[%s1213_s1 + $0x30] sm:$0xff] (!%p239_p3)   ;;  %v1037_v11 = vld [vmem:[%s1215_s3 + $0x18] sm:$0xff] (!%p239_p3)   ;;  %v1038_v13 = vld [vmem:[%s1215_s3 + $0x20] sm:$0xff] (!%p239_p3)  }
   0xa   : > { %975 = vmatpush3.bf16.msra.mxu1 (!%p239_p3), %v1034_v6  ;;  %v1029_v12 = vld [vmem:[%s1213_s1 + $0x38] sm:$0xff] (!%p239_p3)   ;;  %v1039_v14 = vld [vmem:[%s1215_s3 + $0x28] sm:$0xff] (!%p239_p3)   ;;  %v1040_v18 = vld [vmem:[%s1215_s3 + $0x30] sm:$0xff] (!%p239_p3)  }
   0xb   : > { %976 = vmatprep.subr.bf16.mxu1 (!%p239_p3), %v1035_v7  ;;  %v1041_v19 = vld [vmem:[%s1215_s3 + $0x38] sm:$0xff] (!%p239_p3)   ;;  %v875_v20 = vld [vmem:[%s1214_s2] ss:$0 sm:$0xff] (!%p239_p3) }
   0xc   : > { %953 = vmatpush3.bf16.msra.mxu0 (!%p239_p3), %v1023_v1  ;;  %v876_v49 = vld [vmem:[%s1216_s4] ss:$0 sm:$0xff] (!%p239_p3) }
   0xd   : > { %954 = vmatprep.subr.bf16.mxu0 (!%p239_p3), %v1024_v2 }
   0xe   : > { %s1223_s24 = smov (!%p284_p4, %s859_s24), 15  ;;  %977 = vmatpush3.bf16.msra.mxu1 %v1035_v7 }
   0xf   : > { %s860_s29 = sshll.u32 %s1223_s24, 2  ;;  %978 = vmatprep.subr.bf16.mxu1 %v1036_v9 }
  0x10   : > { %s1147_s7 = scalar_lea.vmem %s1212_s0, %s860_s29  ;;  %955 = vmatpush3.bf16.msra.mxu0 %v1024_v2  ;;  %s311_s23 = scalar_lea.vmem %s1217_s5, %s860_s29 }
  0x11   : > { %v1030_v4 = vld [vmem:[%s1147_s7] sm:$0xff]   ;;  %956 = vmatprep.subr.bf16.mxu0 %v1025_v3  ;;  %v1031_v15 = vld [vmem:[%s1147_s7 + $0x8] sm:$0xff]   ;;  %v1032_v16 = vld [vmem:[%s1147_s7 + $0x10] sm:$0xff]  }
  0x12   : > { %966 = vmatprep.mubr.bf16.mxu0 %v1030_v4  ;;  %979 = vmatpush3.bf16.msra.mxu1 %v1036_v9  ;;  %v1033_v17 = vld [vmem:[%s1147_s7 + $0x18] sm:$0xff]  }
  0x13   : > { %980 = vmatprep.subr.bf16.mxu1 %v1037_v11 }
  0x14   : > { %957 = vmatpush3.bf16.msra.mxu0 %v1025_v3 }
  0x15   : > { %958 = vmatprep.subr.bf16.mxu0 %v1026_v5 }
  0x16   : > { %981 = vmatpush3.bf16.msra.mxu1 %v1037_v11 }
  0x17   : > { %982 = vmatprep.subr.bf16.mxu1 %v1038_v13 }
  0x18   : > { %959 = vmatpush3.bf16.msra.mxu0 %v1026_v5 }
  0x19   : > { %960 = vmatprep.subr.bf16.mxu0 %v1027_v8 }
  0x1a   : > { %983 = vmatpush3.bf16.msra.mxu1 %v1038_v13 }
  0x1b   : > { %984 = vmatprep.subr.bf16.mxu1 %v1039_v14 }
  0x1c   : > { %961 = vmatpush3.bf16.msra.mxu0 %v1027_v8 }
  0x1d   : > { %962 = vmatprep.subr.bf16.mxu0 %v1028_v10 }
  0x1e   : > { %985 = vmatpush3.bf16.msra.mxu1 %v1039_v14 }
  0x1f   : > { %986 = vmatprep.subr.bf16.mxu1 %v1040_v18 }
  0x20   : > { %963 = vmatpush3.bf16.msra.mxu0 %v1028_v10 }
  0x21   : > { %964 = vmatprep.subr.bf16.mxu0 %v1029_v12 }
  0x22   : > { %987 = vmatpush3.bf16.msra.mxu1 %v1040_v18 }
  0x23   : > { %988 = vmatprep.subr.bf16.mxu1 %v1041_v19 }
  0x24   : > { %965 = vmatpush3.bf16.msra.mxu0 %v1029_v12 }
  0x26   : > { %989 = vmatpush3.bf16.msra.mxu1 %v1041_v19 }
  0x27   : > { %967 = vmatmul.mubr.bf16.vlgmr.msra.gmra.mrb[0].mxu0 %v1031_v15 }
  0x28   : > { %970 = vmatprep.mubr.bf16.mxu0 %v1032_v16 }
  0x2f   : > { %971 = vmatmul.mubr.bf16.gmra.mrb[4].mxu0 %v1033_v17 }
  0xfa   : > { %v968_v21 = vpop.f32.mrb[0].mxu0 }
  0xfb   : > { %v464_v22 = vpop.f32.mrb[1].mxu0  ;;  %v531_v25 = vadd.f32 %v968_v21, %v875_v20 }
  0xfc   : > { %v529_v23 = vadd.f32 %v875_v20, %v464_v22  ;;  %v969_v24 = vpop.f32.mrb[2].mxu0 }
  0xfd   : > { %v532_v26 = vadd.f32 %v969_v24, %v875_v20  ;;  %v467_v27 = vpop.f32.mrb[3].mxu0  ;;  %v539_v32 = vmul.f32 %v531_v25, %v531_v25 }
  0xfe   : > { %v530_v28 = vadd.f32 %v875_v20, %v467_v27  ;;  %v537_v30 = vmul.f32 %v529_v23, %v529_v23 }
  0xff   : > { %v540_v29 = vmul.f32 %v532_v26, %v532_v26 }
 0x100   : > { %v538_v31 = vmul.f32 %v530_v28, %v530_v28 }
 0x101   : > { %v546_v36 = vpack.c.bf16 %v540_v29, %v539_v32 }
 0x102   : > { %v972_v33 = vpop.f32.mrb[4].mxu0  ;;  %v545_v34 = vpack.c.bf16 %v538_v31, %v537_v30 }
 0x103   : > { %v480_v35 = vpop.f32.mrb[5].mxu0  ;;  %v535_v39 = vadd.f32 %v972_v33, %v875_v20 }
 0x104   : > { %v533_v37 = vadd.f32 %v875_v20, %v480_v35  ;;  %v973_v38 = vpop.f32.mrb[6].mxu0  ;;  %990 = vmatprep.mubr.bf16.mxu1 %v545_v34 }
 0x105   : > { %v536_v40 = vadd.f32 %v973_v38, %v875_v20  ;;  %v483_v41 = vpop.f32.mrb[7].mxu0  ;;  %991 = vmatmul.mubr.bf16.vlgmr.msra.gmra.mrb[0].mxu1 %v546_v36  ;;  %v543_v46 = vmul.f32 %v535_v39, %v535_v39 }
 0x106   : > { %v534_v42 = vadd.f32 %v875_v20, %v483_v41  ;;  %v541_v44 = vmul.f32 %v533_v37, %v533_v37 }
 0x107   : > { %v544_v43 = vmul.f32 %v536_v40, %v536_v40 }
 0x108   : > { %v542_v45 = vmul.f32 %v534_v42, %v534_v42 }
 0x109   : > { %v548_v48 = vpack.c.bf16 %v544_v43, %v543_v46 }
 0x10a   : > { %v547_v47 = vpack.c.bf16 %v542_v45, %v541_v44 }
 0x10c   : > { %994 = vmatprep.mubr.bf16.mxu1 %v547_v47 }
 0x10d   : > { %995 = vmatmul.mubr.bf16.gmra.mrb[4].mxu1 %v548_v48 }
 0x1d8   : > { %v992_v50 = vpop.f32.mrb[0].mxu1 }
 0x1d9   : > { %v663_v51 = vadd.f32 %v992_v50, %v876_v49  ;;  %v654_v52 = vpop.f32.mrb[1].mxu1 }
 0x1da   : > { %v655_v53 = vadd.f32 %v876_v49, %v654_v52  ;;  %v993_v54 = vpop.f32.mrb[2].mxu1 }
 0x1db   : > { %1042 = vrsqrt.f32 %v663_v51  ;;  %v666_v55 = vadd.f32 %v993_v54, %v876_v49  ;;  %v657_v56 = vpop.f32.mrb[3].mxu1 }
 0x1dc   : > { %1044 = vrsqrt.f32 %v655_v53  ;;  %v658_v57 = vadd.f32 %v876_v49, %v657_v56 }
 0x1dd   : > { %1046 = vrsqrt.f32 %v666_v55 }
 0x1de   : > { %1048 = vrsqrt.f32 %v658_v57 }
 0x1e0   : > { %v996_v58 = vpop.f32.mrb[4].mxu1 }
 0x1e1   : > { %v679_v59 = vadd.f32 %v996_v58, %v876_v49  ;;  %v670_v60 = vpop.f32.mrb[5].mxu1 }
 0x1e2   : > { %v671_v61 = vadd.f32 %v876_v49, %v670_v60  ;;  %v997_v62 = vpop.f32.mrb[6].mxu1 }
 0x1e3   : > { %1050 = vrsqrt.f32 %v679_v59  ;;  %v682_v63 = vadd.f32 %v997_v62, %v876_v49  ;;  %v673_v0 = vpop.f32.mrb[7].mxu1 }
 0x1e4   : > { %1052 = vrsqrt.f32 %v671_v61  ;;  %v674_v1 = vadd.f32 %v876_v49, %v673_v0 }
 0x1e5   : > { %v1043_v2 = vpop.eup %1042  ;;  %1054 = vrsqrt.f32 %v682_v63 }
 0x1e6   : > { %v1045_v3 = vpop.eup %1044  ;;  %1056 = vrsqrt.f32 %v674_v1  ;;  %v695_v6 = vmul.f32 %v1043_v2, %v531_v25 }
 0x1e7   : > { %v1047_v4 = vpop.eup %1046  ;;  %v693_v8 = vmul.f32 %v1045_v3, %v529_v23 }
 0x1e8   : > { %v1049_v5 = vpop.eup %1048  ;;  %v696_v7 = vmul.f32 %v1047_v4, %v532_v26 }
 0x1e9   : > { %v694_v9 = vmul.f32 %v1049_v5, %v530_v28 }
 0x1ea   : > { %v911_v10 = vpack.c.bf16 %v696_v7, %v695_v6 }
 0x1eb   : > { %v906_v11 = vpack.c.bf16 %v694_v9, %v693_v8 }
 0x1ec   : > { %923 = vst [vmem:[%s311_s23 + $0x8] sm:$0xff] %v911_v10  }
 0x1ed   : > { %v1051_v12 = vpop.eup %1050  ;;  %907 = vst [vmem:[%s311_s23] sm:$0xff] %v906_v11  }
 0x1ee   : > { %v1053_v13 = vpop.eup %1052  ;;  %v699_v16 = vmul.f32 %v1051_v12, %v535_v39 }
 0x1ef   : > { %v1055_v14 = vpop.eup %1054  ;;  %v697_v18 = vmul.f32 %v1053_v13, %v533_v37 }
 0x1f0   : > { %v1057_v15 = vpop.eup %1056  ;;  %v700_v17 = vmul.f32 %v1055_v14, %v536_v40 }
 0x1f1   : > { %v698_v19 = vmul.f32 %v1057_v15, %v534_v42 }
 0x1f2   : > { %v921_v20 = vpack.c.bf16 %v700_v17, %v699_v16 }
 0x1f3   : > { %v916_v21 = vpack.c.bf16 %v698_v19, %v697_v18 }
 0x1f4   : > { %925 = vst [vmem:[%s311_s23 + $0x18] sm:$0xff] %v921_v20  }
 0x1f5   : > { %924 = vst [vmem:[%s311_s23 + $0x10] sm:$0xff] %v916_v21  }
 0x1f6 PF: > { %s15_s20 = sadd.s32 1, %s1080_s20   ;;  %s1218_s18 = smov %s1076_s19 }
 0x1f7   : > { %p12_p5 = scmp.ge.s32.totalorder %s15_s20, 4   ;;  %s1219_s19 = smov %s1221_s21 }
 0x1f9   :  { %14 = sbr.rel (!%p12_p5) target bundleno = 2 (0x2), region = 84 }

// kernel: sparse_autoencoder9_forward.5
= control target key start
LH: loop header
LB: loop body
LE: loop exit
PB: predicated region body
PF: predicated region fallthrough
CT: control target
= control target key end

     0   :  { %s444_s1 = inlined_call_operand.vmem [shape: bf16[256,128], index: 1, kind: input, shape index: {}]   ;;  %s445_s0 = inlined_call_operand.vmem [shape: bf16[32,256], index: 0, kind: input, shape index: {}]   ;;  %s446_s2 = inlined_call_operand.vmem [shape: f32[1,128], index: 2, kind: input, shape index: {}]   ;;  %s447_s3 = inlined_call_operand.vmem [shape: f32[32,128], index: 3, kind: output, shape index: {}]  }
   0x1   :  { %v327_v0 = vld [vmem:[%s444_s1 + $0x40] sm:$0xff]   ;;  %v329_v2 = vld [vmem:[%s444_s1 + $0x48] sm:$0xff]   ;;  %v331_v4 = vld [vmem:[%s444_s1 + $0x50] sm:$0xff]  }
   0x2   :  { %v328_v1 = vld [vmem:[%s444_s1] sm:$0xff]   ;;  %283 = vmatprep.subr.bf16.mxu0 %v327_v0  ;;  %311 = vmatprep.subr.bf16.mxu1 %v327_v0  ;;  %v330_v3 = vld [vmem:[%s444_s1 + $0x8] sm:$0xff]   ;;  %v332_v5 = vld [vmem:[%s444_s1 + $0x10] sm:$0xff]  }
   0x3   :  { %284 = vmatpush3.bf16.msra.mxu0 %v328_v1  ;;  %319 = vmatpush3.bf16.msra.mxu1 %v328_v1  ;;  %v333_v6 = vld [vmem:[%s444_s1 + $0x58] sm:$0xff]   ;;  %v335_v8 = vld [vmem:[%s444_s1 + $0x60] sm:$0xff]   ;;  %v337_v10 = vld [vmem:[%s444_s1 + $0x68] sm:$0xff]  }
   0x4   :  { %285 = vmatprep.subr.bf16.mxu0 %v329_v2  ;;  %312 = vmatprep.subr.bf16.mxu1 %v329_v2  ;;  %v334_v7 = vld [vmem:[%s444_s1 + $0x18] sm:$0xff]   ;;  %v336_v9 = vld [vmem:[%s444_s1 + $0x20] sm:$0xff]   ;;  %v338_v13 = vld [vmem:[%s444_s1 + $0x28] sm:$0xff]  }
   0x5   :  { %v345_v11 = vld [vmem:[%s445_s0 + $0x4] ss:$8 sps:$4 sm:$0xff]   ;;  %v348_v12 = vld [vmem:[%s445_s0 + $0x14] ss:$8 sps:$4 sm:$0xff]   ;;  %v343_v18 = vld [vmem:[%s445_s0] ss:$8 sps:$4 sm:$0xff]  }
   0x6   :  { %v339_v14 = vld [vmem:[%s444_s1 + $0x70] sm:$0xff]   ;;  %211 = vmatprep.mubr.bf16.mxu0 %v345_v11  ;;  %219 = vmatprep.mubr.bf16.mxu1 %v348_v12  ;;  %v341_v16 = vld [vmem:[%s444_s1 + $0x78] sm:$0xff]   ;;  %v282_v23 = vld [vmem:[%s446_s2] ss:$0 sm:$0xff] }
   0x7   :  { %286 = vmatpush3.bf16.msra.mxu0 %v330_v3  ;;  %320 = vmatpush3.bf16.msra.mxu1 %v330_v3  ;;  %v340_v15 = vld [vmem:[%s444_s1 + $0x30] sm:$0xff]   ;;  %v342_v17 = vld [vmem:[%s444_s1 + $0x38] sm:$0xff]  }
   0x8   :  { %287 = vmatprep.subr.bf16.mxu0 %v331_v4  ;;  %313 = vmatprep.subr.bf16.mxu1 %v331_v4  ;;  %v346_v19 = vld [vmem:[%s445_s0 + $0x10] ss:$8 sps:$4 sm:$0xff]  }
   0xb   :  { %288 = vmatpush3.bf16.msra.mxu0 %v332_v5  ;;  %321 = vmatpush3.bf16.msra.mxu1 %v332_v5 }
   0xc   :  { %289 = vmatprep.subr.bf16.mxu0 %v333_v6  ;;  %314 = vmatprep.subr.bf16.mxu1 %v333_v6 }
   0xf   :  { %290 = vmatpush3.bf16.msra.mxu0 %v334_v7  ;;  %322 = vmatpush3.bf16.msra.mxu1 %v334_v7 }
  0x10   :  { %291 = vmatprep.subr.bf16.mxu0 %v335_v8  ;;  %315 = vmatprep.subr.bf16.mxu1 %v335_v8 }
  0x13   :  { %292 = vmatpush3.bf16.msra.mxu0 %v336_v9  ;;  %323 = vmatpush3.bf16.msra.mxu1 %v336_v9 }
  0x14   :  { %293 = vmatprep.subr.bf16.mxu0 %v337_v10  ;;  %316 = vmatprep.subr.bf16.mxu1 %v337_v10 }
  0x17   :  { %294 = vmatpush3.bf16.msra.mxu0 %v338_v13  ;;  %324 = vmatpush3.bf16.msra.mxu1 %v338_v13 }
  0x18   :  { %295 = vmatprep.subr.bf16.mxu0 %v339_v14  ;;  %317 = vmatprep.subr.bf16.mxu1 %v339_v14 }
  0x1b   :  { %296 = vmatpush3.bf16.msra.mxu0 %v340_v15  ;;  %325 = vmatpush3.bf16.msra.mxu1 %v340_v15 }
  0x1c   :  { %297 = vmatprep.subr.bf16.mxu0 %v341_v16  ;;  %318 = vmatprep.subr.bf16.mxu1 %v341_v16 }
  0x1f   :  { %298 = vmatpush3.bf16.msra.mxu0 %v342_v17  ;;  %326 = vmatpush3.bf16.msra.mxu1 %v342_v17 }
  0x22   :  { %212 = vmatmul.mubr.bf16.vlgmr.msra.gmra.mrb[0].mxu0 %v343_v18  ;;  %220 = vmatmul.mubr.bf16.vlgmr.msra.gmra.mrb[0].mxu1 %v346_v19 }
  0xf5   :  { %v299_v20 = vpop.f32.mrb[0].mxu0  ;;  %v305_v21 = vpop.f32.mrb[0].mxu1 }
  0xf6   :  { %v300_v22 = vpop.f32.mrb[1].mxu0  ;;  %v306_v24 = vpop.f32.mrb[1].mxu1 }
  0xf7   :  { %v301_v25 = vadd.f32 %v300_v22, %v299_v20  ;;  %v307_v26 = vadd.f32 %v306_v24, %v305_v21  ;;  %v302_v27 = vpop.f32.mrb[2].mxu0  ;;  %v308_v28 = vpop.f32.mrb[2].mxu1 }
  0xf8   :  { %v303_v29 = vpop.f32.mrb[3].mxu0  ;;  %v309_v30 = vpop.f32.mrb[3].mxu1 }
  0xf9   :  { %v250_v31 = vadd.f32 %v301_v25, %v282_v23  ;;  %v252_v32 = vadd.f32 %v307_v26, %v282_v23  ;;  %v304_v33 = vadd.f32 %v303_v29, %v302_v27  ;;  %v310_v34 = vadd.f32 %v309_v30, %v308_v28 }
  0xfb   :  { %254 = vst [vmem:[%s447_s3] sm:$0xff] %v250_v31  ;;  %256 = vst [vmem:[%s447_s3 + $0x10] sm:$0xff] %v252_v32  ;;  %v251_v35 = vadd.f32 %v304_v33, %v282_v23  ;;  %v253_v36 = vadd.f32 %v310_v34, %v282_v23 }
  0xfd   :  { %255 = vst [vmem:[%s447_s3 + $0x8] sm:$0xff] %v251_v35  ;;  %257 = vst [vmem:[%s447_s3 + $0x18] sm:$0xff] %v253_v36 }

// kernel: tile.16
= control target key start
LH: loop header
LB: loop body
LE: loop exit
PB: predicated region body
PF: predicated region fallthrough
CT: control target
= control target key end

     0   :  { %s22_s0 = inlined_call_operand.vmem [shape: f32[4], index: 0, kind: input, shape index: {}]   ;;  %s23_s1 = inlined_call_operand.vmem [shape: f32[4,4], index: 1, kind: output, shape index: {}]  }
   0x1   :  { %v4_v0 = vld [vmem:[%s22_s0] ss:$0 sm:$0xff] }
   0x2   :  { %5 = vst [vmem:[%s23_s1] sm:$0xf] %v4_v0 }

// kernel: tile.17
= control target key start
LH: loop header
LB: loop body
LE: loop exit
PB: predicated region body
PF: predicated region fallthrough
CT: control target
= control target key end

     0   :  { %vm7_vm0 = vcmask 31744   ;;  %s37_s8 = smov 4   ;;  %s38_s9 = smov 8   ;;  %vm13_vm1 = vcmask 130144   ;;  %vm19_vm2 = vcmask 97344   ;;  %vm25_vm3 = vcmask 64544   ;;  %s55_s0 = inlined_call_operand.vmem [shape: f32[4,4], index: 0, kind: input, shape index: {}]   ;;  %s56_s1 = inlined_call_operand.vmem [shape: f32[16], index: 1, kind: output, shape index: {}]  }
   0x1   :  { %v4_v0 = vld [vmem:[%s55_s0] sm:$0xf]  ;;  %s36_s0 = smov 12  }
   0x2   :  { %5 = vst [vmem:[#allocation1] sm:$0xf] %v4_v0 }
   0x9   :  { %v10_v1 = vld [vmem:[#allocation1 + $0x3] sm:$0x1]   ;;  %v22_v2 = vld [vmem:[#allocation1 + $0x1] sm:$0x1]   ;;  %v6_v3 = vld [vmem:[#allocation1] sm:$0x1]  }
   0xa   :  { %11 = vrot.lane.b32.xlu0 %v10_v1, %s36_s0  ;;  %23 = vrot.lane.b32.xlu1 %v22_v2, %s37_s8  ;;  %v16_v4 = vld [vmem:[#allocation1 + $0x2] sm:$0x1]   ;;  %8 = vst.msk [vmem:[#allocation0] sm:$0x1] %vm7_vm0, %v6_v3  }
   0xe   :  { %17 = vrot.lane.b32.xlu0 %v16_v4, %s38_s9 }
  0x7c   :  { %v12_v5 = vpop.permute.xlu0 %11   ;;  %v24_v6 = vpop.permute.xlu1 %23  }
  0x7d   :  { %14 = vst.msk [vmem:[#allocation0] sm:$0x1] %vm13_vm1, %v12_v5  }
  0x80   :  { %v18_v7 = vpop.permute.xlu0 %17  }
  0x81   :  { %20 = vst.msk [vmem:[#allocation0] sm:$0x1] %vm19_vm2, %v18_v7  }
  0x82   :  { %26 = vst.msk [vmem:[#allocation0] sm:$0x1] %vm25_vm3, %v24_v6  }
  0x89   :  { %v30_v8 = vld [vmem:[#allocation0] sm:$0x1] }
  0x8a   :  { %32 = vst [vmem:[%s56_s1] sm:$0x1] %v30_v8 }

// kernel: sparse_autoencoder9_forward.6
= control target key start
LH: loop header
LB: loop body
LE: loop exit
PB: predicated region body
PF: predicated region fallthrough
CT: control target
= control target key end

     0   :  { %s2069_s18 = smov 0   ;;  %s2071_s19 = smov 0   ;;  %s2513_s0 = inlined_call_operand.vmem [shape: bf16[32,256], index: 0, kind: input, shape index: {}]   ;;  %s2514_s1 = inlined_call_operand.vmem [shape: bf16[256,512], index: 1, kind: input, shape index: {}]   ;;  %s2515_s2 = inlined_call_operand.vmem [shape: f32[1,512], index: 2, kind: input, shape index: {}]   ;;  %s2516_s3 = inlined_call_operand.vmem [shape: bf16[128,128], index: 3, kind: input, shape index: {}]   ;;  %s2517_s4 = inlined_call_operand.vmem [shape: f32[1,128], index: 4, kind: input, shape index: {}]   ;;  %s2518_s5 = inlined_call_operand.vmem [shape: bf16[32,512], index: 5, kind: output, shape index: {}]  }
   0x1   :  { %s2073_s20 = smov 0  }
   0x2 LB: > { %s34_s21 = sadd.s32 1, %s2031_s19  ;;  %p1595_p0 = scmp.ge.s32.totalorder %s2035_s20, 1  ;;  %s2035_s20 = sphi %s2073_s20, %s15_s20   ;;  %s2031_s19 = sphi %s2071_s19, %s2520_s19   ;;  %s2027_s18 = sphi %s2069_s18, %s2519_s18  }
   0x3   : > { %p36_p1 = scmp.ge.s32.totalorder %s34_s21, 2  ;;  %p246_p2 = scmp.lt.s32.totalorder %s2035_s20, 3 }
   0x5   : > { %s2522_s21 = smov (%p36_p1, %s34_s21), 0  ;;  %p247_p3 = pnand %p1595_p0, %p246_p2 }
   0x6   : > { %v1866_v0 = vld [vmem:[%s2514_s1 + $0x4] ss:$16 sps:$4 sm:$0xff] (!%p247_p3)   ;;  %v1868_v1 = vld [vmem:[%s2514_s1] ss:$16 sps:$4 sm:$0xff] (!%p247_p3)   ;;  %v1889_v8 = vld [vmem:[%s2514_s1 + $0xc] ss:$16 sps:$4 sm:$0xff] (!%p247_p3)  }
   0x7   : > { %250 = sbr.rel (%p247_p3) target bundleno = 560 (0x230), region = 40  ;;  %756 = vmatprep.subr.bf16.mxu0 (!%p247_p3), %v1866_v0  ;;  %v1869_v2 = vld [vmem:[%s2514_s1 + $0x24] ss:$16 sps:$4 sm:$0xff] (!%p247_p3)   ;;  %v1871_v3 = vld [vmem:[%s2514_s1 + $0x20] ss:$16 sps:$4 sm:$0xff] (!%p247_p3)   ;;  %799 = vmatprep.subr.bf16.mxu1 (!%p247_p3), %v1889_v8  ;;  %s1596_s8 = sshll.u32 (!%p247_p3), %s2027_s18, 1 }
   0x8   : > { %757 = vmatpush1.bf16.msra.mxu0 (!%p247_p3), %v1868_v1  ;;  %v1872_v4 = vld [vmem:[%s2514_s1 + $0x44] ss:$16 sps:$4 sm:$0xff] (!%p247_p3)   ;;  %v1874_v5 = vld [vmem:[%s2514_s1 + $0x40] ss:$16 sps:$4 sm:$0xff] (!%p247_p3)   ;;  %v1892_v9 = vld [vmem:[%s2514_s1 + $0x8] ss:$16 sps:$4 sm:$0xff] (!%p247_p3)  }
   0x9   : > { %758 = vmatprep.subr.bf16.mxu0 (!%p247_p3), %v1869_v2  ;;  %v1875_v6 = vld [vmem:[%s2514_s1 + $0x64] ss:$16 sps:$4 sm:$0xff] (!%p247_p3)   ;;  %v1877_v7 = vld [vmem:[%s2514_s1 + $0x60] ss:$16 sps:$4 sm:$0xff] (!%p247_p3)   ;;  %v1895_v11 = vld [vmem:[%s2514_s1 + $0x2c] ss:$16 sps:$4 sm:$0xff] (!%p247_p3)   ;;  %800 = vmatpush1.bf16.msra.mxu1 (!%p247_p3), %v1892_v9 }
   0xa   : > { %v1878_v10 = vld [vmem:[%s2514_s1 + $0x84] ss:$16 sps:$4 sm:$0xff] (!%p247_p3)   ;;  %v1898_v12 = vld [vmem:[%s2514_s1 + $0x28] ss:$16 sps:$4 sm:$0xff] (!%p247_p3)   ;;  %v1880_v13 = vld [vmem:[%s2514_s1 + $0x80] ss:$16 sps:$4 sm:$0xff] (!%p247_p3)   ;;  %801 = vmatprep.subr.bf16.mxu1 (!%p247_p3), %v1895_v11 }
   0xb   : > { %v1881_v14 = vld [vmem:[%s2514_s1 + $0xa4] ss:$16 sps:$4 sm:$0xff] (!%p247_p3)   ;;  %v1901_v15 = vld [vmem:[%s2514_s1 + $0x4c] ss:$16 sps:$4 sm:$0xff] (!%p247_p3)   ;;  %v1904_v16 = vld [vmem:[%s2514_s1 + $0x48] ss:$16 sps:$4 sm:$0xff] (!%p247_p3)  }
   0xc   : > { %759 = vmatpush1.bf16.msra.mxu0 (!%p247_p3), %v1871_v3  ;;  %v1883_v17 = vld [vmem:[%s2514_s1 + $0xa0] ss:$16 sps:$4 sm:$0xff] (!%p247_p3)   ;;  %v1907_v18 = vld [vmem:[%s2514_s1 + $0x6c] ss:$16 sps:$4 sm:$0xff] (!%p247_p3)   ;;  %v1884_v19 = vld [vmem:[%s2514_s1 + $0xc4] ss:$16 sps:$4 sm:$0xff] (!%p247_p3)  }
   0xd   : > { %760 = vmatprep.subr.bf16.mxu0 (!%p247_p3), %v1872_v4  ;;  %802 = vmatpush1.bf16.msra.mxu1 (!%p247_p3), %v1898_v12  ;;  %p300_p4 = scmp.lt.s32.totalorder (!%p247_p3), %s1596_s8, 3  ;;  %v1886_v20 = vld [vmem:[%s2514_s1 + $0xc0] ss:$16 sps:$4 sm:$0xff] (!%p247_p3)   ;;  %v1910_v21 = vld [vmem:[%s2514_s1 + $0x68] ss:$16 sps:$4 sm:$0xff] (!%p247_p3)   ;;  %v2037_v1 = vmov (!%p247_p3), 0.0  }
   0xe   : > { %803 = vmatprep.subr.bf16.mxu1 %v1901_v15  ;;  %v1913_v22 = vld [vmem:[%s2514_s1 + $0x8c] ss:$16 sps:$4 sm:$0xff]   ;;  %v1887_v23 = vld [vmem:[%s2514_s1 + $0xe4] ss:$16 sps:$4 sm:$0xff]   ;;  %v1916_v24 = vld [vmem:[%s2514_s1 + $0x88] ss:$16 sps:$4 sm:$0xff]  }
   0xf   : > { %s2524_s8 = smov (!%p300_p4, %s1596_s8), 3  ;;  %v1891_v25 = vld [vmem:[%s2514_s1 + $0xe0] ss:$16 sps:$4 sm:$0xff]   ;;  %v1919_v26 = vld [vmem:[%s2514_s1 + $0xac] ss:$16 sps:$4 sm:$0xff]   ;;  %vm2038_vm0 = vmmov 0  }
  0x10   : > { %761 = vmatpush1.bf16.msra.mxu0 %v1874_v5  ;;  %v1893_v27 = vld [vmem:[%s2514_s1 + $0x104] ss:$16 sps:$4 sm:$0xff]   ;;  %s1714_s12 = sshll.u32 %s2524_s8, 3  ;;  %v1897_v28 = vld [vmem:[%s2514_s1 + $0x100] ss:$16 sps:$4 sm:$0xff]   ;;  %v1967_v3 = vld [vmem:[%s2516_s3 + $0x8] sm:$0xff]  }
  0x11   : > { %762 = vmatprep.subr.bf16.mxu0 %v1875_v6  ;;  %804 = vmatpush1.bf16.msra.mxu1 %v1904_v16  ;;  %v1922_v29 = vld [vmem:[%s2514_s1 + $0xa8] ss:$16 sps:$4 sm:$0xff]   ;;  %v1925_v30 = vld [vmem:[%s2514_s1 + $0xcc] ss:$16 sps:$4 sm:$0xff]   ;;  %s2189_s24 = scalar_lea.vmem %s2513_s0, %s1714_s12  ;;  %v1899_v31 = vld [vmem:[%s2514_s1 + $0x124] ss:$16 sps:$4 sm:$0xff]  }
  0x12   : > { %805 = vmatprep.subr.bf16.mxu1 %v1907_v18  ;;  %v1928_v32 = vld [vmem:[%s2514_s1 + $0xc8] ss:$16 sps:$4 sm:$0xff]   ;;  %v1943_v33 = vld [vmem:[%s2189_s24 + $0x4] ss:$8 sps:$4 sm:$0xff]   ;;  %v1903_v34 = vld [vmem:[%s2514_s1 + $0x120] ss:$16 sps:$4 sm:$0xff]  }
  0x13   : > { %v1931_v35 = vld [vmem:[%s2514_s1 + $0xec] ss:$16 sps:$4 sm:$0xff]   ;;  %v1905_v36 = vld [vmem:[%s2514_s1 + $0x144] ss:$16 sps:$4 sm:$0xff]   ;;  %788 = vmatprep.mubr.bf16.mxu0 %v1943_v33  ;;  %831 = vmatprep.mubr.bf16.mxu1 %v1943_v33  ;;  %v1934_v37 = vld [vmem:[%s2514_s1 + $0xe8] ss:$16 sps:$4 sm:$0xff]  }
  0x14   : > { %763 = vmatpush1.bf16.msra.mxu0 %v1877_v7  ;;  %v1909_v38 = vld [vmem:[%s2514_s1 + $0x140] ss:$16 sps:$4 sm:$0xff]   ;;  %v1937_v39 = vld [vmem:[%s2514_s1 + $0x10c] ss:$16 sps:$4 sm:$0xff]   ;;  %v1911_v40 = vld [vmem:[%s2514_s1 + $0x164] ss:$16 sps:$4 sm:$0xff]  }
  0x15   : > { %764 = vmatprep.subr.bf16.mxu0 %v1878_v10  ;;  %806 = vmatpush1.bf16.msra.mxu1 %v1910_v21  ;;  %v1940_v41 = vld [vmem:[%s2514_s1 + $0x108] ss:$16 sps:$4 sm:$0xff]   ;;  %v1915_v42 = vld [vmem:[%s2514_s1 + $0x160] ss:$16 sps:$4 sm:$0xff]   ;;  %v1944_v43 = vld [vmem:[%s2514_s1 + $0x12c] ss:$16 sps:$4 sm:$0xff]  }
  0x16   : > { %807 = vmatprep.subr.bf16.mxu1 %v1913_v22  ;;  %v1917_v44 = vld [vmem:[%s2514_s1 + $0x184] ss:$16 sps:$4 sm:$0xff]   ;;  %v1921_v45 = vld [vmem:[%s2514_s1 + $0x180] ss:$16 sps:$4 sm:$0xff]   ;;  %v1946_v46 = vld [vmem:[%s2514_s1 + $0x128] ss:$16 sps:$4 sm:$0xff]  }
  0x17   : > { %v1947_v47 = vld [vmem:[%s2514_s1 + $0x14c] ss:$16 sps:$4 sm:$0xff]   ;;  %v1923_v48 = vld [vmem:[%s2514_s1 + $0x1a4] ss:$16 sps:$4 sm:$0xff]   ;;  %v1927_v49 = vld [vmem:[%s2514_s1 + $0x1a0] ss:$16 sps:$4 sm:$0xff]  }
  0x18   : > { %765 = vmatpush1.bf16.msra.mxu0 %v1880_v13  ;;  %v1949_v50 = vld [vmem:[%s2514_s1 + $0x148] ss:$16 sps:$4 sm:$0xff]   ;;  %v1950_v51 = vld [vmem:[%s2514_s1 + $0x16c] ss:$16 sps:$4 sm:$0xff]   ;;  %v1929_v52 = vld [vmem:[%s2514_s1 + $0x1c4] ss:$16 sps:$4 sm:$0xff]  }
  0x19   : > { %766 = vmatprep.subr.bf16.mxu0 %v1881_v14  ;;  %808 = vmatpush1.bf16.msra.mxu1 %v1916_v24  ;;  %v1933_v53 = vld [vmem:[%s2514_s1 + $0x1c0] ss:$16 sps:$4 sm:$0xff]   ;;  %v1935_v54 = vld [vmem:[%s2514_s1 + $0x1e4] ss:$16 sps:$4 sm:$0xff]   ;;  %v1952_v55 = vld [vmem:[%s2514_s1 + $0x168] ss:$16 sps:$4 sm:$0xff]  }
  0x1a   : > { %809 = vmatprep.subr.bf16.mxu1 %v1919_v26  ;;  %v1953_v56 = vld [vmem:[%s2514_s1 + $0x18c] ss:$16 sps:$4 sm:$0xff]   ;;  %v1955_v57 = vld [vmem:[%s2514_s1 + $0x188] ss:$16 sps:$4 sm:$0xff]   ;;  %v1939_v58 = vld [vmem:[%s2514_s1 + $0x1e0] ss:$16 sps:$4 sm:$0xff]  }
  0x1b   : > { %v1956_v59 = vld [vmem:[%s2514_s1 + $0x1ac] ss:$16 sps:$4 sm:$0xff]   ;;  %v1941_v60 = vld [vmem:[%s2189_s24] ss:$8 sps:$4 sm:$0xff]   ;;  %v1969_v5 = vld [vmem:[%s2516_s3 + $0x10] sm:$0xff]   ;;  %s1715_s11 = sshll.u32 %s2524_s8, 4 }
  0x1c   : > { %767 = vmatpush1.bf16.msra.mxu0 %v1883_v17  ;;  %v1958_v61 = vld [vmem:[%s2514_s1 + $0x1a8] ss:$16 sps:$4 sm:$0xff]   ;;  %v1959_v62 = vld [vmem:[%s2514_s1 + $0x1cc] ss:$16 sps:$4 sm:$0xff]   ;;  %v1965_v63 = vld [vmem:[%s2516_s3] sm:$0xff]   ;;  %s2483_s14 = scalar_lea.vmem %s2518_s5, %s1715_s11 }
  0x1d   : > { %768 = vmatprep.subr.bf16.mxu0 %v1884_v19  ;;  %810 = vmatpush1.bf16.msra.mxu1 %v1922_v29  ;;  %v1961_v0 = vld [vmem:[%s2514_s1 + $0x1c8] ss:$16 sps:$4 sm:$0xff]   ;;  %v1962_v2 = vld [vmem:[%s2514_s1 + $0x1ec] ss:$16 sps:$4 sm:$0xff]   ;;  %v1966_v6 = vld [vmem:[%s2516_s3] sm:$0xff]   ;;  %v871_v19 = vlaneseq }
  0x1e   : > { %811 = vmatprep.subr.bf16.mxu1 %v1925_v30  ;;  %v1964_v4 = vld [vmem:[%s2514_s1 + $0x1e8] ss:$16 sps:$4 sm:$0xff]   ;;  %v1973_v9 = vld [vmem:[%s2516_s3 + $0x20] sm:$0xff]   ;;  %v1970_v10 = vld [vmem:[%s2516_s3 + $0x10] sm:$0xff]  }
  0x1f   : > { %v1971_v7 = vld [vmem:[%s2516_s3 + $0x18] sm:$0xff]   ;;  %v1968_v8 = vld [vmem:[%s2516_s3 + $0x8] sm:$0xff]   ;;  %v1974_v13 = vld [vmem:[%s2516_s3 + $0x20] sm:$0xff]  }
  0x20   : > { %769 = vmatpush1.bf16.msra.mxu0 %v1886_v20  ;;  %v1975_v11 = vld [vmem:[%s2516_s3 + $0x28] sm:$0xff]   ;;  %v1972_v12 = vld [vmem:[%s2516_s3 + $0x18] sm:$0xff]   ;;  %v1977_v15 = vld [vmem:[%s2516_s3 + $0x30] sm:$0xff]   ;;  %v2362_v20 = vshrl.u32 %v871_v19, 7 }
  0x21   : > { %770 = vmatprep.subr.bf16.mxu0 %v1887_v23  ;;  %812 = vmatpush1.bf16.msra.mxu1 %v1928_v32  ;;  %v1976_v14 = vld [vmem:[%s2516_s3 + $0x28] sm:$0xff]   ;;  %v1978_v16 = vld [vmem:[%s2516_s3 + $0x30] sm:$0xff]   ;;  %v1979_v17 = vld [vmem:[%s2516_s3 + $0x38] sm:$0xff]  }
  0x22   : > { %813 = vmatprep.subr.bf16.mxu1 %v1931_v35  ;;  %v1980_v18 = vld [vmem:[%s2516_s3 + $0x38] sm:$0xff]   ;;  %v873_v21 = vsub.s32 0, %v2362_v20  ;;  %v869_v22 = vld [vmem:[%s2515_s2] sm:$0xf]  ;;  %v877_v23 = vsub.s32 1, %v2362_v20 }
  0x24   : > { %771 = vmatpush1.bf16.msra.mxu0 %v1891_v25  ;;  %v874_v24 = vrot.slane %v869_v22, %v873_v21  ;;  %v878_v25 = vrot.slane %v869_v22, %v877_v23 }
  0x25   : > { %772 = vmatprep.subr.bf16.mxu0 %v1893_v27  ;;  %814 = vmatpush1.bf16.msra.mxu1 %v1934_v37 }
  0x26   : > { %815 = vmatprep.subr.bf16.mxu1 %v1937_v39 }
  0x28   : > { %773 = vmatpush1.bf16.msra.mxu0 %v1897_v28 }
  0x29   : > { %774 = vmatprep.subr.bf16.mxu0 %v1899_v31  ;;  %816 = vmatpush1.bf16.msra.mxu1 %v1940_v41 }
  0x2a   : > { %817 = vmatprep.subr.bf16.mxu1 %v1944_v43  ;;  %v1984_v43 = vld [vmem:[%s2516_s3 + $0x8] sm:$0xff]  }
  0x2c   : > { %775 = vmatpush1.bf16.msra.mxu0 %v1903_v34 }
  0x2d   : > { %776 = vmatprep.subr.bf16.mxu0 %v1905_v36  ;;  %818 = vmatpush1.bf16.msra.mxu1 %v1946_v46 }
  0x2e   : > { %819 = vmatprep.subr.bf16.mxu1 %v1947_v47  ;;  %v1985_v47 = vld [vmem:[%s2516_s3 + $0x10] sm:$0xff]  }
  0x30   : > { %777 = vmatpush1.bf16.msra.mxu0 %v1909_v38  ;;  %v1981_v38 = vld [vmem:[%s2516_s3] sm:$0xff]  }
  0x31   : > { %778 = vmatprep.subr.bf16.mxu0 %v1911_v40  ;;  %820 = vmatpush1.bf16.msra.mxu1 %v1949_v50  ;;  %v1982_v40 = vld [vmem:[%s2516_s3] sm:$0xff]   ;;  %v1987_v50 = vld [vmem:[%s2516_s3 + $0x18] sm:$0xff]  }
  0x32   : > { %821 = vmatprep.subr.bf16.mxu1 %v1950_v51  ;;  %v1988_v51 = vld [vmem:[%s2516_s3 + $0x18] sm:$0xff]  }
  0x34   : > { %779 = vmatpush1.bf16.msra.mxu0 %v1915_v42  ;;  %v1983_v42 = vld [vmem:[%s2516_s3 + $0x8] sm:$0xff]  }
  0x35   : > { %780 = vmatprep.subr.bf16.mxu0 %v1917_v44  ;;  %822 = vmatpush1.bf16.msra.mxu1 %v1952_v55  ;;  %v885_v55 = vsub.s32 3, %v2362_v20 }
  0x36   : > { %823 = vmatprep.subr.bf16.mxu1 %v1953_v56  ;;  %v1991_v56 = vld [vmem:[%s2516_s3 + $0x28] sm:$0xff]  }
  0x38   : > { %781 = vmatpush1.bf16.msra.mxu0 %v1921_v45 }
  0x39   : > { %782 = vmatprep.subr.bf16.mxu0 %v1923_v48  ;;  %824 = vmatpush1.bf16.msra.mxu1 %v1955_v57 }
  0x3a   : > { %825 = vmatprep.subr.bf16.mxu1 %v1956_v59  ;;  %v886_v59 = vrot.slane %v869_v22, %v885_v55 }
  0x3c   : > { %783 = vmatpush1.bf16.msra.mxu0 %v1927_v49  ;;  %v1986_v49 = vld [vmem:[%s2516_s3 + $0x10] sm:$0xff]  }
  0x3d   : > { %784 = vmatprep.subr.bf16.mxu0 %v1929_v52  ;;  %826 = vmatpush1.bf16.msra.mxu1 %v1958_v61  ;;  %v1989_v52 = vld [vmem:[%s2516_s3 + $0x20] sm:$0xff]  }
  0x3e   : > { %827 = vmatprep.subr.bf16.mxu1 %v1959_v62 }
  0x40   : > { %785 = vmatpush1.bf16.msra.mxu0 %v1933_v53  ;;  %v1990_v53 = vld [vmem:[%s2516_s3 + $0x20] sm:$0xff]  }
  0x41   : > { %786 = vmatprep.subr.bf16.mxu0 %v1935_v54  ;;  %828 = vmatpush1.bf16.msra.mxu1 %v1961_v0  ;;  %v881_v54 = vsub.s32 2, %v2362_v20 }
  0x42   : > { %829 = vmatprep.subr.bf16.mxu1 %v1962_v2 }
  0x43   : > { %v882_v57 = vrot.slane %v869_v22, %v881_v54 }
  0x44   : > { %787 = vmatpush1.bf16.msra.mxu0 %v1939_v58  ;;  %v1992_v58 = vld [vmem:[%s2516_s3 + $0x28] sm:$0xff]  }
  0x45   : > { %1760 = vmatprep.subr.bf16.mxu0 %v2037_v1  ;;  %830 = vmatpush1.bf16.msra.mxu1 %v1964_v4 }
  0x46   : > { %1780 = vmatprep.subr.bf16.mxu1 %v2037_v1 }
  0x47   : > { %789 = vmatmul.mubr.bf16.vlgmr.msra.gmra.mrb[0].mxu0 %v1941_v60 }
  0x48   : > { %1761 = vmatpush3.bf16.msra.mxu0 %v1965_v63  ;;  %832 = vmatmul.mubr.bf16.vlgmr.msra.gmra.mrb[0].mxu1 %v1941_v60  ;;  %v1993_v60 = vld [vmem:[%s2516_s3 + $0x30] sm:$0xff]  }
  0x49   : > { %1762 = vmatprep.subr.bf16.mxu0 %v2037_v1  ;;  %1781 = vmatpush3.bf16.msra.mxu1 %v1966_v6  ;;  %v1994_v63 = vld [vmem:[%s2516_s3 + $0x30] sm:$0xff]   ;;  %v1996_v6 = vld [vmem:[%s2516_s3 + $0x38] sm:$0xff]  }
  0x4a   : > { %1782 = vmatprep.subr.bf16.mxu1 %v2037_v1  ;;  %1776 = vmatprep.mubr.msk.bf16.mxu0 %vm2038_vm0, %v2037_v1 }
  0x4b   : > { %1796 = vmatprep.mubr.msk.bf16.mxu1 %vm2038_vm0, %v2037_v1 }
  0x4c   : > { %1763 = vmatpush3.bf16.msra.mxu0 %v1967_v3  ;;  %v1995_v3 = vld [vmem:[%s2516_s3 + $0x38] sm:$0xff]  }
  0x4d   : > { %1764 = vmatprep.subr.bf16.mxu0 %v2037_v1  ;;  %1783 = vmatpush3.bf16.msra.mxu1 %v1968_v8 }
  0x4e   : > { %1784 = vmatprep.subr.bf16.mxu1 %v2037_v1 }
  0x50   : > { %1765 = vmatpush3.bf16.msra.mxu0 %v1969_v5 }
  0x51   : > { %1766 = vmatprep.subr.bf16.mxu0 %v2037_v1  ;;  %1785 = vmatpush3.bf16.msra.mxu1 %v1970_v10 }
  0x52   : > { %1786 = vmatprep.subr.bf16.mxu1 %v2037_v1 }
  0x54   : > { %1767 = vmatpush3.bf16.msra.mxu0 %v1971_v7 }
  0x55   : > { %1768 = vmatprep.subr.bf16.mxu0 %v2037_v1  ;;  %1787 = vmatpush3.bf16.msra.mxu1 %v1972_v12 }
  0x56   : > { %1788 = vmatprep.subr.bf16.mxu1 %v2037_v1 }
  0x58   : > { %1769 = vmatpush3.bf16.msra.mxu0 %v1973_v9 }
  0x59   : > { %1770 = vmatprep.subr.bf16.mxu0 %v2037_v1  ;;  %1789 = vmatpush3.bf16.msra.mxu1 %v1974_v13 }
  0x5a   : > { %1790 = vmatprep.subr.bf16.mxu1 %v2037_v1 }
  0x5c   : > { %1771 = vmatpush3.bf16.msra.mxu0 %v1975_v11  ;;  %v2472_v11 = vld [vmem:[%s2517_s4] ss:$0 sm:$0xff] }
  0x5d   : > { %1772 = vmatprep.subr.bf16.mxu0 %v2037_v1  ;;  %1791 = vmatpush3.bf16.msra.mxu1 %v1976_v14 }
  0x5e   : > { %1792 = vmatprep.subr.bf16.mxu1 %v2037_v1 }
  0x60   : > { %1773 = vmatpush3.bf16.msra.mxu0 %v1977_v15 }
  0x61   : > { %1793 = vmatpush3.bf16.msra.mxu1 %v1978_v16  ;;  %1774 = vmatprep.subr.bf16.mxu0 %v2037_v1 }
  0x62   : > { %1794 = vmatprep.subr.bf16.mxu1 %v2037_v1 }
  0x64   : > { %1775 = vmatpush3.bf16.msra.mxu0 %v1979_v17 }
  0x65   : > { %1795 = vmatpush3.bf16.msra.mxu1 %v1980_v18  ;;  %1800 = vmatprep.subr.bf16.mxu0 %v2037_v1 }
  0x66   : > { %1820 = vmatprep.subr.bf16.mxu1 %v2037_v1 }
 0x11a   : > { %v790_v26 = vpop.f32.mrb[0].mxu0 }
 0x11b   : > { %v2369_v27 = vadd.f32 %v874_v24, %v790_v26  ;;  %v792_v28 = vpop.f32.mrb[1].mxu0  ;;  %v833_v44 = vpop.f32.mrb[0].mxu1 }
 0x11c   : > { %v2371_v29 = vadd.f32 %v878_v25, %v792_v28  ;;  %v794_v30 = vpop.f32.mrb[2].mxu0  ;;  %v835_v45 = vpop.f32.mrb[1].mxu1  ;;  %v2440_v61 = vadd.f32 %v882_v57, %v833_v44 }
 0x11d   : > { %v2373_v31 = vadd.f32 %v874_v24, %v794_v30  ;;  %v796_v32 = vpop.f32.mrb[3].mxu0  ;;  %v899_v34 = vmul.f32 %v2369_v27, %v2369_v27  ;;  %v837_v46 = vpop.f32.mrb[2].mxu1  ;;  %v2448_v0 = vadd.f32 %v886_v59, %v835_v45 }
 0x11e   : > { %v2375_v33 = vadd.f32 %v878_v25, %v796_v32  ;;  %v1040_v36 = vmul.f32 %v2371_v29, %v2371_v29  ;;  %v839_v48 = vpop.f32.mrb[3].mxu1  ;;  %v2442_v62 = vadd.f32 %v882_v57, %v837_v46  ;;  %v1181_v4 = vmul.f32 %v2440_v61, %v2440_v61 }
 0x11f   : > { %v900_v35 = vmul.f32 %v2373_v31, %v2373_v31  ;;  %v2450_v2 = vadd.f32 %v886_v59, %v839_v48  ;;  %v1322_v7 = vmul.f32 %v2448_v0, %v2448_v0 }
 0x120   : > { %v1041_v37 = vmul.f32 %v2375_v33, %v2375_v33  ;;  %v1182_v5 = vmul.f32 %v2442_v62, %v2442_v62 }
 0x121   : > { %v901_v39 = vpack.c.bf16 %v900_v35, %v899_v34  ;;  %v1323_v8 = vmul.f32 %v2450_v2, %v2450_v2 }
 0x122   : > { %v1042_v41 = vpack.c.bf16 %v1041_v37, %v1040_v36  ;;  %v1183_v9 = vpack.c.bf16 %v1182_v5, %v1181_v4 }
 0x123   : > { %1777 = vmatmul.mubr.bf16.vlgmr.msra.gmra.mrb[4].mxu0 %v901_v39  ;;  %v1324_v10 = vpack.c.bf16 %v1323_v8, %v1322_v7 }
 0x124   : > { %1801 = vmatpush3.bf16.msra.mxu0 %v1981_v38  ;;  %1797 = vmatmul.mubr.bf16.vlgmr.msra.gmra.mrb[4].mxu1 %v1042_v41 }
 0x125   : > { %1821 = vmatpush3.bf16.msra.mxu1 %v1982_v40  ;;  %1802 = vmatprep.subr.bf16.mxu0 %v2037_v1 }
 0x126   : > { %1822 = vmatprep.subr.bf16.mxu1 %v2037_v1  ;;  %1816 = vmatprep.mubr.msk.bf16.mxu0 %vm2038_vm0, %v2037_v1 }
 0x127   : > { %1836 = vmatprep.mubr.msk.bf16.mxu1 %vm2038_vm0, %v2037_v1 }
 0x128   : > { %1803 = vmatpush3.bf16.msra.mxu0 %v1983_v42 }
 0x129   : > { %1823 = vmatpush3.bf16.msra.mxu1 %v1984_v43  ;;  %1804 = vmatprep.subr.bf16.mxu0 %v2037_v1 }
 0x12a   : > { %1824 = vmatprep.subr.bf16.mxu1 %v2037_v1 }
 0x12c   : > { %1805 = vmatpush3.bf16.msra.mxu0 %v1985_v47 }
 0x12d   : > { %1825 = vmatpush3.bf16.msra.mxu1 %v1986_v49  ;;  %1806 = vmatprep.subr.bf16.mxu0 %v2037_v1 }
 0x12e   : > { %1826 = vmatprep.subr.bf16.mxu1 %v2037_v1 }
 0x130   : > { %1807 = vmatpush3.bf16.msra.mxu0 %v1987_v50 }
 0x131   : > { %1827 = vmatpush3.bf16.msra.mxu1 %v1988_v51  ;;  %1808 = vmatprep.subr.bf16.mxu0 %v2037_v1 }
 0x132   : > { %1828 = vmatprep.subr.bf16.mxu1 %v2037_v1 }
 0x134   : > { %1809 = vmatpush3.bf16.msra.mxu0 %v1989_v52 }
 0x135   : > { %1829 = vmatpush3.bf16.msra.mxu1 %v1990_v53  ;;  %1810 = vmatprep.subr.bf16.mxu0 %v2037_v1 }
 0x136   : > { %1830 = vmatprep.subr.bf16.mxu1 %v2037_v1 }
 0x138   : > { %1811 = vmatpush3.bf16.msra.mxu0 %v1991_v56 }
 0x139   : > { %1831 = vmatpush3.bf16.msra.mxu1 %v1992_v58  ;;  %1812 = vmatprep.subr.bf16.mxu0 %v2037_v1 }
 0x13a   : > { %1832 = vmatprep.subr.bf16.mxu1 %v2037_v1 }
 0x13c   : > { %1813 = vmatpush3.bf16.msra.mxu0 %v1993_v60 }
 0x13d   : > { %1833 = vmatpush3.bf16.msra.mxu1 %v1994_v63  ;;  %1814 = vmatprep.subr.bf16.mxu0 %v2037_v1 }
 0x13e   : > { %1834 = vmatprep.subr.bf16.mxu1 %v2037_v1 }
 0x140   : > { %1815 = vmatpush3.bf16.msra.mxu0 %v1995_v3 }
 0x141   : > { %1835 = vmatpush3.bf16.msra.mxu1 %v1996_v6 }
 0x143   : > { %1817 = vmatmul.mubr.bf16.vlgmr.msra.gmra.mrb[8].mxu0 %v1183_v9 }
 0x144   : > { %1837 = vmatmul.mubr.bf16.vlgmr.msra.gmra.mrb[8].mxu1 %v1324_v10 }
 0x1f6   : > { %v1007_v12 = vpop.f32.mrb[4].mxu0 }
 0x1f7   : > { %v1008_v13 = vadd.f32 %v2472_v11, %v1007_v12  ;;  %v1778_v14 = vpop.f32.mrb[5].mxu0  ;;  %v1148_v15 = vpop.f32.mrb[4].mxu1 }
 0x1f8   : > { %v1149_v16 = vadd.f32 %v2472_v11, %v1148_v15  ;;  %v1010_v17 = vpop.f32.mrb[6].mxu0  ;;  %v1798_v1 = vpop.f32.mrb[5].mxu1 }
 0x1f9   : > { %1997 = vrsqrt.f32 %v1008_v13  ;;  %v1779_v18 = vpop.f32.mrb[7].mxu0  ;;  %v1151_v19 = vpop.f32.mrb[6].mxu1  ;;  %v1011_v21 = vadd.f32 %v2472_v11, %v1010_v17  ;;  %vm1016_vm1 = vcmp.eq.f32.partialorder %v1008_v13, inf  ;;  %v1019_v26 = vand.u32 2147483648, %v1008_v13 }
 0x1fa   : > { %1999 = vrsqrt.f32 %v1149_v16  ;;  %v1799_v20 = vpop.f32.mrb[7].mxu1  ;;  %v1152_v22 = vadd.f32 %v2472_v11, %v1151_v19  ;;  %vm1018_vm2 = vcmp.eq.f32.partialorder %v1008_v13, 0.0  ;;  %vm1157_vm3 = vcmp.eq.f32.partialorder %v1149_v16, inf }
 0x1fb   : > { %2001 = vrsqrt.f32 %v1011_v21  ;;  %v1160_v32 = vand.u32 2147483648, %v1149_v16  ;;  %vm1159_vm4 = vcmp.eq.f32.partialorder %v1149_v16, 0.0  ;;  %vm1023_vm5 = vcmp.eq.f32.partialorder %v1011_v21, inf }
 0x1fc   : > { %2003 = vrsqrt.f32 %v1152_v22  ;;  %vm1025_vm6 = vcmp.eq.f32.partialorder %v1011_v21, 0.0  ;;  %v1026_v42 = vand.u32 2147483648, %v1011_v21  ;;  %vm1164_vm7 = vcmp.eq.f32.partialorder %v1152_v22, inf }
 0x1fd   : > { %vm1166_vm8 = vcmp.eq.f32.partialorder %v1152_v22, 0.0 }
 0x203   : > { %v1998_v23 = vpop.eup %1997 }
 0x204   : > { %v2000_v24 = vpop.eup %1999  ;;  %v1015_v25 = vmul.f32 %v1998_v23, %v1008_v13 }
 0x205   : > { %v1156_v28 = vmul.f32 %v2000_v24, %v1149_v16  ;;  %v2002_v34 = vpop.eup %2001 }
 0x206   : > { %v1017_v30 = vsel %vm1016_vm1, %v1008_v13, %v1015_v25  ;;  %v2004_v37 = vpop.eup %2003  ;;  %v1022_v40 = vmul.f32 %v2002_v34, %v1011_v21 }
 0x207   : > { %v1020_v35 = vsel %vm1018_vm2, %v1019_v26, %v1017_v30  ;;  %v1158_v36 = vsel %vm1157_vm3, %v1149_v16, %v1156_v28  ;;  %v1163_v43 = vmul.f32 %v2004_v37, %v1152_v22 }
 0x208   : > { %v1028_v38 = vmul.f32 %v1020_v35, %v2369_v27  ;;  %v1161_v39 = vsel %vm1159_vm4, %v1160_v32, %v1158_v36  ;;  %v1024_v45 = vsel %vm1023_vm5, %v1011_v21, %v1022_v40  ;;  %v1167_v27 = vand.u32 2147483648, %v1152_v22 }
 0x209   : > { %v1169_v41 = vmul.f32 %v1161_v39, %v2371_v29  ;;  %v1027_v47 = vsel %vm1025_vm6, %v1026_v42, %v1024_v45  ;;  %v1165_v48 = vsel %vm1164_vm7, %v1152_v22, %v1163_v43 }
 0x20a   : > { %v1716_v44 = vpack.c.bf16 %v1028_v38, %v1028_v38  ;;  %v1029_v49 = vmul.f32 %v1027_v47, %v2373_v31  ;;  %v1168_v50 = vsel %vm1166_vm8, %v1167_v27, %v1165_v48 }
 0x20b   : > { %v1718_v46 = vpack.c.bf16 %v1169_v41, %v1169_v41  ;;  %v1170_v29 = vmul.f32 %v1168_v50, %v2375_v33 }
 0x20c   : > { %1038 = vst [vmem:[%s2483_s14] sm:$0xf] %v1716_v44  ;;  %v1717_v51 = vpack.c.bf16 %v1029_v49, %v1029_v49 }
 0x20d   : > { %1179 = vst [vmem:[%s2483_s14 + $0x4] sm:$0xf] %v1718_v46  ;;  %v1719_v52 = vpack.c.bf16 %v1170_v29, %v1170_v29 }
 0x20e   : > { %1039 = vst [vmem:[%s2483_s14 + $0x10] sm:$0xf] %v1717_v51 }
 0x20f   : > { %1180 = vst [vmem:[%s2483_s14 + $0x14] sm:$0xf] %v1719_v52 }
 0x216   : > { %v1289_v53 = vpop.f32.mrb[8].mxu0 }
 0x217   : > { %v1290_v54 = vadd.f32 %v2472_v11, %v1289_v53  ;;  %v1818_v55 = vpop.f32.mrb[9].mxu0  ;;  %v1430_v56 = vpop.f32.mrb[8].mxu1 }
 0x218   : > { %v1431_v57 = vadd.f32 %v2472_v11, %v1430_v56  ;;  %v1292_v58 = vpop.f32.mrb[10].mxu0  ;;  %v1838_v59 = vpop.f32.mrb[9].mxu1 }
 0x219   : > { %2005 = vrsqrt.f32 %v1290_v54  ;;  %v1819_v60 = vpop.f32.mrb[11].mxu0  ;;  %v1433_v31 = vpop.f32.mrb[10].mxu1  ;;  %v1293_v33 = vadd.f32 %v2472_v11, %v1292_v58  ;;  %vm1298_vm9 = vcmp.eq.f32.partialorder %v1290_v54, inf  ;;  %v1301_v7 = vand.u32 2147483648, %v1290_v54 }
 0x21a   : > { %2007 = vrsqrt.f32 %v1431_v57  ;;  %v1839_v63 = vpop.f32.mrb[11].mxu1  ;;  %v1434_v3 = vadd.f32 %v2472_v11, %v1433_v31  ;;  %vm1300_vm10 = vcmp.eq.f32.partialorder %v1290_v54, 0.0  ;;  %vm1439_vm11 = vcmp.eq.f32.partialorder %v1431_v57, inf }
 0x21b   : > { %2009 = vrsqrt.f32 %v1293_v33  ;;  %v1442_v10 = vand.u32 2147483648, %v1431_v57  ;;  %vm1441_vm12 = vcmp.eq.f32.partialorder %v1431_v57, 0.0  ;;  %vm1305_vm13 = vcmp.eq.f32.partialorder %v1293_v33, inf }
 0x21c   : > { %2011 = vrsqrt.f32 %v1434_v3  ;;  %vm1307_vm14 = vcmp.eq.f32.partialorder %v1293_v33, 0.0  ;;  %v1308_v18 = vand.u32 2147483648, %v1293_v33  ;;  %vm1446_vm15 = vcmp.eq.f32.partialorder %v1434_v3, inf }
 0x21d   : > { %v1449_v22 = vand.u32 2147483648, %v1434_v3  ;;  %vm1448_vm0 = vcmp.eq.f32.partialorder %v1434_v3, 0.0 }
 0x223   : > { %v2006_v4 = vpop.eup %2005 }
 0x224   : > { %v2008_v5 = vpop.eup %2007  ;;  %v1297_v6 = vmul.f32 %v2006_v4, %v1290_v54 }
 0x225   : > { %v1438_v8 = vmul.f32 %v2008_v5, %v1431_v57  ;;  %v2010_v12 = vpop.eup %2009 }
 0x226   : > { %v1299_v9 = vsel %vm1298_vm9, %v1290_v54, %v1297_v6  ;;  %v2012_v15 = vpop.eup %2011  ;;  %v1304_v17 = vmul.f32 %v2010_v12, %v1293_v33 }
 0x227   : > { %v1302_v13 = vsel %vm1300_vm10, %v1301_v7, %v1299_v9  ;;  %v1440_v14 = vsel %vm1439_vm11, %v1431_v57, %v1438_v8  ;;  %v1445_v19 = vmul.f32 %v2012_v15, %v1434_v3 }
 0x228   : > { %v1310_v16 = vmul.f32 %v1302_v13, %v2440_v61  ;;  %v1443_v11 = vsel %vm1441_vm12, %v1442_v10, %v1440_v14  ;;  %v1306_v21 = vsel %vm1305_vm13, %v1293_v33, %v1304_v17 }
 0x229   : > { %v1451_v1 = vmul.f32 %v1443_v11, %v2448_v0  ;;  %v1309_v24 = vsel %vm1307_vm14, %v1308_v18, %v1306_v21  ;;  %v1447_v25 = vsel %vm1446_vm15, %v1434_v3, %v1445_v19 }
 0x22a   : > { %v1720_v20 = vpack.c.bf16 %v1310_v16, %v1310_v16  ;;  %v1311_v61 = vmul.f32 %v1309_v24, %v2442_v62  ;;  %v1450_v26 = vsel %vm1448_vm0, %v1449_v22, %v1447_v25 }
 0x22b   : > { %v1722_v23 = vpack.c.bf16 %v1451_v1, %v1451_v1  ;;  %v1452_v0 = vmul.f32 %v1450_v26, %v2450_v2 }
 0x22c   : > { %1320 = vst [vmem:[%s2483_s14 + $0x8] sm:$0xf] %v1720_v20  ;;  %v1721_v28 = vpack.c.bf16 %v1311_v61, %v1311_v61 }
 0x22d   : > { %1461 = vst [vmem:[%s2483_s14 + $0xc] sm:$0xf] %v1722_v23  ;;  %v1723_v30 = vpack.c.bf16 %v1452_v0, %v1452_v0 }
 0x22e   : > { %1321 = vst [vmem:[%s2483_s14 + $0x18] sm:$0xf] %v1721_v28 }
 0x22f   : > { %1462 = vst [vmem:[%s2483_s14 + $0x1c] sm:$0xf] %v1723_v30 }
 0x230 PF: > { %s15_s20 = sadd.s32 1, %s2035_s20   ;;  %s2519_s18 = smov %s2031_s19 }
 0x231   : > { %p12_p5 = scmp.ge.s32.totalorder %s15_s20, 4   ;;  %s2520_s19 = smov %s2522_s21 }
 0x233   :  { %14 = sbr.rel (!%p12_p5) target bundleno = 2 (0x2), region = 84 }

// kernel: sparse_autoencoder9_forward.7
= control target key start
LH: loop header
LB: loop body
LE: loop exit
PB: predicated region body
PF: predicated region fallthrough
CT: control target
= control target key end

     0   :  { %s586_s1 = inlined_call_operand.vmem [shape: bf16[128,128], index: 1, kind: input, shape index: {}]   ;;  %s587_s0 = inlined_call_operand.vmem [shape: bf16[128,128], index: 0, kind: input, shape index: {}]   ;;  %s588_s2 = inlined_call_operand.vmem [shape: f32[1,128], index: 2, kind: input, shape index: {}]   ;;  %s589_s3 = inlined_call_operand.vmem [shape: f32[128,128], index: 3, kind: output, shape index: {}]  }
   0x1   :  { %v451_v0 = vld [vmem:[%s586_s1] sm:$0xff]   ;;  %v452_v1 = vld [vmem:[%s586_s1 + $0x8] sm:$0xff]   ;;  %v453_v2 = vld [vmem:[%s586_s1 + $0x10] sm:$0xff]  }
   0x2   :  { %403 = vmatprep.subr.bf16.mxu0 %v451_v0  ;;  %435 = vmatprep.subr.bf16.mxu1 %v451_v0  ;;  %v454_v3 = vld [vmem:[%s586_s1 + $0x18] sm:$0xff]   ;;  %v459_v4 = vld [vmem:[%s587_s0] sm:$0xff]   ;;  %v456_v7 = vld [vmem:[%s586_s1 + $0x28] sm:$0xff]  }
   0x3   :  { %404 = vmatpush3.bf16.msra.mxu0 %v451_v0  ;;  %443 = vmatpush3.bf16.msra.mxu1 %v451_v0  ;;  %v460_v5 = vld [vmem:[%s587_s0 + $0x20] sm:$0xff]   ;;  %v457_v8 = vld [vmem:[%s586_s1 + $0x30] sm:$0xff]   ;;  %v458_v9 = vld [vmem:[%s586_s1 + $0x38] sm:$0xff]  }
   0x4   :  { %405 = vmatprep.subr.bf16.mxu0 %v452_v1  ;;  %436 = vmatprep.subr.bf16.mxu1 %v452_v1  ;;  %v455_v6 = vld [vmem:[%s586_s1 + $0x20] sm:$0xff]   ;;  %v461_v10 = vld [vmem:[%s587_s0 + $0x8] sm:$0xff]   ;;  %v463_v12 = vld [vmem:[%s587_s0 + $0x10] sm:$0xff]  }
   0x5   :  { %419 = vmatprep.mubr.bf16.mxu0 %v459_v4  ;;  %427 = vmatprep.mubr.bf16.mxu1 %v460_v5  ;;  %v462_v11 = vld [vmem:[%s587_s0 + $0x28] sm:$0xff]   ;;  %v464_v13 = vld [vmem:[%s587_s0 + $0x30] sm:$0xff]   ;;  %v465_v14 = vld [vmem:[%s587_s0 + $0x18] sm:$0xff]  }
   0x6   :  { %v466_v15 = vld [vmem:[%s587_s0 + $0x38] sm:$0xff]   ;;  %v386_v16 = vld [vmem:[%s588_s2] ss:$0 sm:$0xff] }
   0x7   :  { %406 = vmatpush3.bf16.msra.mxu0 %v452_v1  ;;  %444 = vmatpush3.bf16.msra.mxu1 %v452_v1 }
   0x8   :  { %407 = vmatprep.subr.bf16.mxu0 %v453_v2  ;;  %437 = vmatprep.subr.bf16.mxu1 %v453_v2 }
   0xb   :  { %408 = vmatpush3.bf16.msra.mxu0 %v453_v2  ;;  %445 = vmatpush3.bf16.msra.mxu1 %v453_v2 }
   0xc   :  { %409 = vmatprep.subr.bf16.mxu0 %v454_v3  ;;  %438 = vmatprep.subr.bf16.mxu1 %v454_v3 }
   0xf   :  { %410 = vmatpush3.bf16.msra.mxu0 %v454_v3  ;;  %446 = vmatpush3.bf16.msra.mxu1 %v454_v3 }
  0x10   :  { %411 = vmatprep.subr.bf16.mxu0 %v455_v6  ;;  %439 = vmatprep.subr.bf16.mxu1 %v455_v6 }
  0x13   :  { %412 = vmatpush3.bf16.msra.mxu0 %v455_v6  ;;  %447 = vmatpush3.bf16.msra.mxu1 %v455_v6 }
  0x14   :  { %413 = vmatprep.subr.bf16.mxu0 %v456_v7  ;;  %440 = vmatprep.subr.bf16.mxu1 %v456_v7 }
  0x17   :  { %414 = vmatpush3.bf16.msra.mxu0 %v456_v7  ;;  %448 = vmatpush3.bf16.msra.mxu1 %v456_v7 }
  0x18   :  { %415 = vmatprep.subr.bf16.mxu0 %v457_v8  ;;  %441 = vmatprep.subr.bf16.mxu1 %v457_v8 }
  0x1b   :  { %416 = vmatpush3.bf16.msra.mxu0 %v457_v8  ;;  %449 = vmatpush3.bf16.msra.mxu1 %v457_v8 }
  0x1c   :  { %417 = vmatprep.subr.bf16.mxu0 %v458_v9  ;;  %442 = vmatprep.subr.bf16.mxu1 %v458_v9 }
  0x1f   :  { %418 = vmatpush3.bf16.msra.mxu0 %v458_v9  ;;  %450 = vmatpush3.bf16.msra.mxu1 %v458_v9 }
  0x22   :  { %420 = vmatmul.mubr.bf16.vlgmr.msra.gmra.mrb[0].mxu0 %v461_v10  ;;  %428 = vmatmul.mubr.bf16.vlgmr.msra.gmra.mrb[0].mxu1 %v462_v11 }
  0x23   :  { %423 = vmatprep.mubr.bf16.mxu0 %v463_v12  ;;  %431 = vmatprep.mubr.bf16.mxu1 %v464_v13 }
  0x2a   :  { %424 = vmatmul.mubr.bf16.gmra.mrb[4].mxu0 %v465_v14  ;;  %432 = vmatmul.mubr.bf16.gmra.mrb[4].mxu1 %v466_v15 }
  0xf5   :  { %v421_v17 = vpop.f32.mrb[0].mxu0  ;;  %v429_v18 = vpop.f32.mrb[0].mxu1 }
  0xf6   :  { %v336_v19 = vadd.f32 %v421_v17, %v386_v16  ;;  %v344_v20 = vadd.f32 %v429_v18, %v386_v16  ;;  %v213_v21 = vpop.f32.mrb[1].mxu0  ;;  %v245_v22 = vpop.f32.mrb[1].mxu1 }
  0xf7   :  { %v334_v23 = vadd.f32 %v386_v16, %v213_v21  ;;  %v342_v24 = vadd.f32 %v386_v16, %v245_v22  ;;  %v422_v25 = vpop.f32.mrb[2].mxu0  ;;  %v430_v26 = vpop.f32.mrb[2].mxu1 }
  0xf8   :  { %352 = vst [vmem:[%s589_s3 + $0x10] sm:$0xff] %v336_v19  ;;  %360 = vst [vmem:[%s589_s3 + $0x50] sm:$0xff] %v344_v20  ;;  %v337_v27 = vadd.f32 %v422_v25, %v386_v16  ;;  %v345_v28 = vadd.f32 %v430_v26, %v386_v16  ;;  %v216_v29 = vpop.f32.mrb[3].mxu0  ;;  %v248_v30 = vpop.f32.mrb[3].mxu1 }
  0xf9   :  { %350 = vst [vmem:[%s589_s3] sm:$0xff] %v334_v23  ;;  %358 = vst [vmem:[%s589_s3 + $0x40] sm:$0xff] %v342_v24  ;;  %v335_v31 = vadd.f32 %v386_v16, %v216_v29  ;;  %v343_v32 = vadd.f32 %v386_v16, %v248_v30 }
  0xfa   :  { %353 = vst [vmem:[%s589_s3 + $0x18] sm:$0xff] %v337_v27  ;;  %361 = vst [vmem:[%s589_s3 + $0x58] sm:$0xff] %v345_v28 }
  0xfb   :  { %351 = vst [vmem:[%s589_s3 + $0x8] sm:$0xff] %v335_v31  ;;  %359 = vst [vmem:[%s589_s3 + $0x48] sm:$0xff] %v343_v32 }
  0xfd   :  { %v425_v33 = vpop.f32.mrb[4].mxu0  ;;  %v433_v34 = vpop.f32.mrb[4].mxu1 }
  0xfe   :  { %v340_v35 = vadd.f32 %v425_v33, %v386_v16  ;;  %v348_v36 = vadd.f32 %v433_v34, %v386_v16  ;;  %v229_v37 = vpop.f32.mrb[5].mxu0  ;;  %v261_v38 = vpop.f32.mrb[5].mxu1 }
  0xff   :  { %v338_v39 = vadd.f32 %v386_v16, %v229_v37  ;;  %v346_v40 = vadd.f32 %v386_v16, %v261_v38  ;;  %v426_v41 = vpop.f32.mrb[6].mxu0  ;;  %v434_v42 = vpop.f32.mrb[6].mxu1 }
 0x100   :  { %356 = vst [vmem:[%s589_s3 + $0x30] sm:$0xff] %v340_v35  ;;  %364 = vst [vmem:[%s589_s3 + $0x70] sm:$0xff] %v348_v36  ;;  %v341_v43 = vadd.f32 %v426_v41, %v386_v16  ;;  %v349_v44 = vadd.f32 %v434_v42, %v386_v16  ;;  %v232_v45 = vpop.f32.mrb[7].mxu0  ;;  %v264_v46 = vpop.f32.mrb[7].mxu1 }
 0x101   :  { %354 = vst [vmem:[%s589_s3 + $0x20] sm:$0xff] %v338_v39  ;;  %362 = vst [vmem:[%s589_s3 + $0x60] sm:$0xff] %v346_v40  ;;  %v339_v47 = vadd.f32 %v386_v16, %v232_v45  ;;  %v347_v48 = vadd.f32 %v386_v16, %v264_v46 }
 0x102   :  { %357 = vst [vmem:[%s589_s3 + $0x38] sm:$0xff] %v341_v43  ;;  %365 = vst [vmem:[%s589_s3 + $0x78] sm:$0xff] %v349_v44 }
 0x103   :  { %355 = vst [vmem:[%s589_s3 + $0x28] sm:$0xff] %v339_v47  ;;  %363 = vst [vmem:[%s589_s3 + $0x68] sm:$0xff] %v347_v48 }

</bundles_post_ra>
